<compile_context>
chip_gen: v7x
topology: tpu7x:2x2x1
jax: 0.10.0
libtpu: 0.0.40
codegen_flags: <defaults>
</compile_context>

<pallas_src>
import functools
import math

import jax
import jax.numpy as jnp
from jax.experimental import pallas as pl
from jax.experimental.pallas import tpu as pltpu


def _spatial_att_kernel(x_ref, par_ref, o_ref, *, C, B, KJ):
    # x_ref:   (B*C, HW)  B images; channels on sublanes, pixels on lanes (lane-dense)
    # par_ref: (5 + C,)   SMEM scalars: [b_map, w_q, b_q, w_k, b_k, w_map_0..w_map_{C-1}]
    # o_ref:   (B*C, HW)
    hw = x_ref.shape[1]
    b_map = par_ref[0]
    w_q, b_q = par_ref[1], par_ref[2]
    w_k, b_k = par_ref[3], par_ref[4]

    for bi in range(B):                                   # B is tiny (typically 2) -> unrolled
        base = bi * C
        xb = x_ref[base:base + C, :]                      # (C, HW)

        # self.map: per-pixel channel contraction as C unrolled scalar FMAs (weights in SMEM).
        att_row = par_ref[5] * xb[0:1, :]
        for c in range(1, C):
            att_row = att_row + par_ref[5 + c] * xb[c:c + 1, :]
        att_row = att_row + b_map                         # (1, HW)

        # 1x1 conv on the single-channel map == scalar affine.
        q_row = w_q * att_row + b_q                       # (1, HW)  queries i (lanes)

        # Exact row max of S[i, j] = q_i * k_j (rank-1): the extremum over j is reached at
        # k's max or min, which are affine images of att's extrema.
        att_max = jnp.max(att_row, axis=1, keepdims=True)  # (1, 1)
        att_min = jnp.min(att_row, axis=1, keepdims=True)  # (1, 1)
        kc1 = w_k * att_max + b_k
        kc2 = w_k * att_min + b_k
        k_hi = jnp.maximum(kc1, kc2)
        k_lo = jnp.minimum(kc1, kc2)
        m_row = jnp.maximum(q_row * k_hi, q_row * k_lo)    # (1, HW)  exact row max

        # Keys/values also needed on the sublane axis: one native 8-sublane transpose.
        att_col = jnp.transpose(jnp.broadcast_to(att_row, (8, hw)))[:, 0:1]   # (HW, 1)
        k_col = w_k * att_col + b_k                                           # (HW, 1)

        # Fused softmax(q k^T) @ att: stream key strips of KJ sublanes, keep running
        # denominator / numerator sums.  The (HW, HW) matrix never exists.
        den = jnp.zeros((1, hw), jnp.float32)
        num = jnp.zeros((1, hw), jnp.float32)
        for s in range(0, hw, KJ):
            kj = k_col[s:s + KJ, :]                        # (KJ, 1)
            aj = att_col[s:s + KJ, :]                      # (KJ, 1)
            e = jnp.exp(kj * q_row - m_row)                # (KJ, HW)   EUP
            den = den + jnp.sum(e, axis=0, keepdims=True)  # (1, HW)
            num = num + jnp.sum(e * aj, axis=0, keepdims=True)

        # softsign(num/den) = num / (den + |num|)  since den > 0 (sum of exps).
        gate = num / (den + jnp.abs(num))                  # (1, HW)
        o_ref[base:base + C, :] = (xb * gate).astype(o_ref.dtype)   # lane-dense store
        # (the output block DMA'd back to HBM is the full dense (B*C, HW) tile)


def _batches_per_step(n, c):
    # Smallest B making B*C a multiple of 8 (sublane-dense blocks), if N allows.
    want = 8 // math.gcd(c, 8)
    if want > 1 and n % want == 0:
        return want
    return 1


def _key_strip(hw):
    for kj in (64, 32, 16, 8):
        if hw % kj == 0:
            return kj
    return hw


def spatial_att_pallas(x_nchw, w_map, b_map, w_q, b_q, w_k, b_k):
    """SpatialAtt forward.

    x_nchw: (N, C, H, W) float32
    w_map : (1, C, 1, 1), b_map: (1,)   -- self.map    (nn.Conv2d(C, 1, 1))
    w_q   : (1, 1, 1, 1), b_q  : (1,)   -- self.q_conv (nn.Conv2d(1, 1, 1))
    w_k   : (1, 1, 1, 1), b_k  : (1,)   -- self.k_conv (nn.Conv2d(1, 1, 1))
    """
    N, C, H, W = x_nchw.shape
    HW = H * W
    B = _batches_per_step(N, C)
    G = N // B
    KJ = _key_strip(HW)

    # NCHW already has the spatial axis last -> free reshapes, no transpose/pad HBM passes.
    x3 = x_nchw.reshape(G, B * C, HW)

    params = jnp.concatenate([
        jnp.stack([b_map.reshape(()), w_q.reshape(()), b_q.reshape(()),
                   w_k.reshape(()), b_k.reshape(())]),
        w_map.reshape(C),
    ]).astype(jnp.float32)

    cost = pl.CostEstimate(
        flops=int(6 * N * HW * HW),            # score, sub-max, den/num accumulation
        transcendentals=int(N * HW * HW),      # one exp per (query, key) pair
        bytes_accessed=int(2 * N * C * HW * 4),
    )

    kernel = functools.partial(_spatial_att_kernel, C=C, B=B, KJ=KJ)

    out3 = pl.pallas_call(
        kernel,
        out_shape=jax.ShapeDtypeStruct((G, B * C, HW), x3.dtype),
        grid_spec=pltpu.PrefetchScalarGridSpec(
            num_scalar_prefetch=0,
            grid=(G,),                                                 # B images per step
            in_specs=[
                pl.BlockSpec((None, B * C, HW), lambda g: (g, 0, 0)),  # x: sublane/lane-dense
                pl.BlockSpec(memory_space=pltpu.MemorySpace.SMEM),     # 5 + C scalars in SMEM
            ],
            out_specs=pl.BlockSpec((None, B * C, HW), lambda g: (g, 0, 0)),
        ),
        compiler_params=pltpu.CompilerParams(
            dimension_semantics=("parallel",)),                        # independent image groups
        cost_estimate=cost,
    )(x3, params)

    return out3.reshape(N, C, H, W)
    # TODO(synk): for very large H*W, promote the key-strip loop to an "arbitrary" grid
    # axis (partial den/num accumulators; same exact m, so no online-max needed) to bound
    # per-step latency — memory is already O(HW) since the attention matrix is never formed.


if __name__ == "__main__":
    key = jax.random.PRNGKey(0)
    N, C, H, W = 2, 4, 16, 16
    ks = jax.random.split(key, 7)
    x = jax.random.normal(ks[0], (N, C, H, W), dtype=jnp.float32)
    # Conv2d parameter shapes: map=(1,C,1,1)+(1,), q_conv=k_conv=(1,1,1,1)+(1,)
    w_map = jax.random.normal(ks[1], (1, C, 1, 1), dtype=jnp.float32) * 0.5
    b_map = jax.random.normal(ks[2], (1,), dtype=jnp.float32) * 0.5
    w_q = jax.random.normal(ks[3], (1, 1, 1, 1), dtype=jnp.float32) * 0.5
    b_q = jax.random.normal(ks[4], (1,), dtype=jnp.float32) * 0.5
    w_k = jax.random.normal(ks[5], (1, 1, 1, 1), dtype=jnp.float32) * 0.5
    b_k = jax.random.normal(ks[6], (1,), dtype=jnp.float32) * 0.5

    out = spatial_att_pallas(x, w_map, b_map, w_q, b_q, w_k, b_k)
    jax.block_until_ready(out)

    # Plain-JAX reference (same math as the PyTorch forward), elementwise/reduce only
    # so it stays in exact f32 and is directly comparable to the kernel.
    x3 = x.reshape(N, C, H * W)
    att = jnp.sum(w_map[0, :, 0, 0][None, :, None] * x3, axis=1) + b_map[0]    # (N, HW)
    q = w_q.reshape(()) * att + b_q[0]
    k = w_k.reshape(()) * att + b_k[0]
    s = q[:, :, None] * k[:, None, :]                                          # (N, HW, HW)
    a = jax.nn.softmax(s, axis=-1)
    att_o = jnp.sum(a * att[:, None, :], axis=-1)                              # (N, HW)
    ref = ((att_o / (1.0 + jnp.abs(att_o)))[:, None, :] * x3).reshape(N, C, H, W)

    assert out.shape == x.shape
    err = float(jnp.max(jnp.abs(out - ref)))
    assert jnp.allclose(out, ref, atol=1e-4, rtol=1e-4), err
    print("KERNEL_OK")
</pallas_src>

<mosaic_0001>
module attributes {stable_mosaic.version = 11 : i64} {
  func.func @_spatial_att_kernel(%arg0: i32, %arg1: memref<1x8x256xf32, #tpu.memory_space<vmem>>, %arg2: memref<9xf32, #tpu.memory_space<smem>>, %arg3: memref<1x8x256xf32, #tpu.memory_space<vmem>>) attributes {dimension_semantics = [#tpu.dimension_semantics<parallel>], iteration_bounds = array<i64: 1>, scalar_prefetch = 0 : i64, scratch_operands = 0 : i64, tpu.core_type = #tpu.core_type<tc>, window_params = [{transform_indices = @transform_0, window_bounds = array<i64: 1, 8, 256>}, {transform_indices = @transform_1, window_bounds = array<i64: 9>}, {transform_indices = @transform_2, window_bounds = array<i64: 1, 8, 256>}]} {
    %c0 = arith.constant 0 : index
    %0 = memref.load %arg2[%c0] : memref<9xf32, #tpu.memory_space<smem>>
    %c1 = arith.constant 1 : index
    %1 = memref.load %arg2[%c1] : memref<9xf32, #tpu.memory_space<smem>>
    %c2 = arith.constant 2 : index
    %2 = memref.load %arg2[%c2] : memref<9xf32, #tpu.memory_space<smem>>
    %c3 = arith.constant 3 : index
    %3 = memref.load %arg2[%c3] : memref<9xf32, #tpu.memory_space<smem>>
    %c4 = arith.constant 4 : index
    %4 = memref.load %arg2[%c4] : memref<9xf32, #tpu.memory_space<smem>>
    %c0_0 = arith.constant 0 : index
    %c0_1 = arith.constant 0 : index
    %c0_2 = arith.constant 0 : index
    %5 = vector.load %arg1[%c0_0, %c0_1, %c0_2] : memref<1x8x256xf32, #tpu.memory_space<vmem>>, vector<1x4x256xf32>
    %6 = vector.shape_cast %5 : vector<1x4x256xf32> to vector<4x256xf32>
    %c5 = arith.constant 5 : index
    %7 = memref.load %arg2[%c5] : memref<9xf32, #tpu.memory_space<smem>>
    %8 = vector.extract_strided_slice %6 {offsets = [0, 0], sizes = [1, 256], strides = [1, 1]} : vector<4x256xf32> to vector<1x256xf32>
    %9 = vector.broadcast %7 : f32 to vector<1x256xf32>
    %10 = arith.mulf %9, %8 : vector<1x256xf32>
    %c6 = arith.constant 6 : index
    %11 = memref.load %arg2[%c6] : memref<9xf32, #tpu.memory_space<smem>>
    %12 = vector.extract_strided_slice %6 {offsets = [1, 0], sizes = [1, 256], strides = [1, 1]} : vector<4x256xf32> to vector<1x256xf32>
    %13 = vector.broadcast %11 : f32 to vector<1x256xf32>
    %14 = arith.mulf %13, %12 : vector<1x256xf32>
    %15 = arith.addf %10, %14 : vector<1x256xf32>
    %c7 = arith.constant 7 : index
    %16 = memref.load %arg2[%c7] : memref<9xf32, #tpu.memory_space<smem>>
    %17 = vector.extract_strided_slice %6 {offsets = [2, 0], sizes = [1, 256], strides = [1, 1]} : vector<4x256xf32> to vector<1x256xf32>
    %18 = vector.broadcast %16 : f32 to vector<1x256xf32>
    %19 = arith.mulf %18, %17 : vector<1x256xf32>
    %20 = arith.addf %15, %19 : vector<1x256xf32>
    %c8 = arith.constant 8 : index
    %21 = memref.load %arg2[%c8] : memref<9xf32, #tpu.memory_space<smem>>
    %22 = vector.extract_strided_slice %6 {offsets = [3, 0], sizes = [1, 256], strides = [1, 1]} : vector<4x256xf32> to vector<1x256xf32>
    %23 = vector.broadcast %21 : f32 to vector<1x256xf32>
    %24 = arith.mulf %23, %22 : vector<1x256xf32>
    %25 = arith.addf %20, %24 : vector<1x256xf32>
    %26 = vector.broadcast %0 : f32 to vector<1x256xf32>
    %27 = arith.addf %25, %26 : vector<1x256xf32>
    %28 = vector.broadcast %1 : f32 to vector<1x256xf32>
    %29 = arith.mulf %28, %27 : vector<1x256xf32>
    %30 = vector.broadcast %2 : f32 to vector<1x256xf32>
    %31 = arith.addf %29, %30 : vector<1x256xf32>
    %cst = arith.constant dense<0xFF800000> : vector<1xf32>
    %32 = vector.multi_reduction <maximumf>, %27, %cst [1] : vector<1x256xf32> to vector<1xf32>
    %33 = vector.shape_cast %32 : vector<1xf32> to vector<1x1xf32>
    %cst_3 = arith.constant dense<0x7F800000> : vector<1xf32>
    %34 = vector.multi_reduction <minimumf>, %27, %cst_3 [1] : vector<1x256xf32> to vector<1xf32>
    %35 = vector.shape_cast %34 : vector<1xf32> to vector<1x1xf32>
    %36 = vector.broadcast %3 : f32 to vector<1x1xf32>
    %37 = arith.mulf %36, %33 : vector<1x1xf32>
    %38 = vector.broadcast %4 : f32 to vector<1x1xf32>
    %39 = arith.addf %37, %38 : vector<1x1xf32>
    %40 = vector.broadcast %3 : f32 to vector<1x1xf32>
    %41 = arith.mulf %40, %35 : vector<1x1xf32>
    %42 = vector.broadcast %4 : f32 to vector<1x1xf32>
    %43 = arith.addf %41, %42 : vector<1x1xf32>
    %44 = arith.maximumf %39, %43 : vector<1x1xf32>
    %45 = arith.minimumf %39, %43 : vector<1x1xf32>
    %46 = vector.broadcast %44 : vector<1x1xf32> to vector<1x256xf32>
    %47 = arith.mulf %31, %46 : vector<1x256xf32>
    %48 = vector.broadcast %45 : vector<1x1xf32> to vector<1x256xf32>
    %49 = arith.mulf %31, %48 : vector<1x256xf32>
    %50 = arith.maximumf %47, %49 : vector<1x256xf32>
    %51 = vector.shape_cast %27 : vector<1x256xf32> to vector<1x256xf32>
    %52 = vector.broadcast %51 : vector<1x256xf32> to vector<8x256xf32>
    %53 = tpu.transpose %52, [1, 0] : vector<8x256xf32> -> vector<256x8xf32>
    %54 = vector.extract_strided_slice %53 {offsets = [0, 0], sizes = [256, 1], strides = [1, 1]} : vector<256x8xf32> to vector<256x1xf32>
    %55 = vector.broadcast %3 : f32 to vector<256x1xf32>
    %56 = arith.mulf %55, %54 : vector<256x1xf32>
    %57 = vector.broadcast %4 : f32 to vector<256x1xf32>
    %58 = arith.addf %56, %57 : vector<256x1xf32>
    %cst_4 = arith.constant 0.000000e+00 : f32
    %59 = vector.broadcast %cst_4 : f32 to vector<1x256xf32>
    %cst_5 = arith.constant 0.000000e+00 : f32
    %60 = vector.broadcast %cst_5 : f32 to vector<1x256xf32>
    %61 = vector.extract_strided_slice %58 {offsets = [0, 0], sizes = [64, 1], strides = [1, 1]} : vector<256x1xf32> to vector<64x1xf32>
    %62 = vector.extract_strided_slice %54 {offsets = [0, 0], sizes = [64, 1], strides = [1, 1]} : vector<256x1xf32> to vector<64x1xf32>
    %63 = vector.broadcast %61 : vector<64x1xf32> to vector<64x256xf32>
    %64 = vector.broadcast %31 : vector<1x256xf32> to vector<64x256xf32>
    %65 = arith.mulf %63, %64 : vector<64x256xf32>
    %66 = vector.broadcast %50 : vector<1x256xf32> to vector<64x256xf32>
    %67 = arith.subf %65, %66 : vector<64x256xf32>
    %68 = math.exp %67 : vector<64x256xf32>
    %cst_6 = arith.constant dense<0.000000e+00> : vector<256xf32>
    %69 = vector.multi_reduction <add>, %68, %cst_6 [0] : vector<64x256xf32> to vector<256xf32>
    %70 = vector.shape_cast %69 : vector<256xf32> to vector<1x256xf32>
    %71 = arith.addf %59, %70 : vector<1x256xf32>
    %72 = vector.broadcast %62 : vector<64x1xf32> to vector<64x256xf32>
    %73 = arith.mulf %68, %72 : vector<64x256xf32>
    %cst_7 = arith.constant dense<0.000000e+00> : vector<256xf32>
    %74 = vector.multi_reduction <add>, %73, %cst_7 [0] : vector<64x256xf32> to vector<256xf32>
    %75 = vector.shape_cast %74 : vector<256xf32> to vector<1x256xf32>
    %76 = arith.addf %60, %75 : vector<1x256xf32>
    %77 = vector.extract_strided_slice %58 {offsets = [64, 0], sizes = [64, 1], strides = [1, 1]} : vector<256x1xf32> to vector<64x1xf32>
    %78 = vector.extract_strided_slice %54 {offsets = [64, 0], sizes = [64, 1], strides = [1, 1]} : vector<256x1xf32> to vector<64x1xf32>
    %79 = vector.broadcast %77 : vector<64x1xf32> to vector<64x256xf32>
    %80 = vector.broadcast %31 : vector<1x256xf32> to vector<64x256xf32>
    %81 = arith.mulf %79, %80 : vector<64x256xf32>
    %82 = vector.broadcast %50 : vector<1x256xf32> to vector<64x256xf32>
    %83 = arith.subf %81, %82 : vector<64x256xf32>
    %84 = math.exp %83 : vector<64x256xf32>
    %cst_8 = arith.constant dense<0.000000e+00> : vector<256xf32>
    %85 = vector.multi_reduction <add>, %84, %cst_8 [0] : vector<64x256xf32> to vector<256xf32>
    %86 = vector.shape_cast %85 : vector<256xf32> to vector<1x256xf32>
    %87 = arith.addf %71, %86 : vector<1x256xf32>
    %88 = vector.broadcast %78 : vector<64x1xf32> to vector<64x256xf32>
    %89 = arith.mulf %84, %88 : vector<64x256xf32>
    %cst_9 = arith.constant dense<0.000000e+00> : vector<256xf32>
    %90 = vector.multi_reduction <add>, %89, %cst_9 [0] : vector<64x256xf32> to vector<256xf32>
    %91 = vector.shape_cast %90 : vector<256xf32> to vector<1x256xf32>
    %92 = arith.addf %76, %91 : vector<1x256xf32>
    %93 = vector.extract_strided_slice %58 {offsets = [128, 0], sizes = [64, 1], strides = [1, 1]} : vector<256x1xf32> to vector<64x1xf32>
    %94 = vector.extract_strided_slice %54 {offsets = [128, 0], sizes = [64, 1], strides = [1, 1]} : vector<256x1xf32> to vector<64x1xf32>
    %95 = vector.broadcast %93 : vector<64x1xf32> to vector<64x256xf32>
    %96 = vector.broadcast %31 : vector<1x256xf32> to vector<64x256xf32>
    %97 = arith.mulf %95, %96 : vector<64x256xf32>
    %98 = vector.broadcast %50 : vector<1x256xf32> to vector<64x256xf32>
    %99 = arith.subf %97, %98 : vector<64x256xf32>
    %100 = math.exp %99 : vector<64x256xf32>
    %cst_10 = arith.constant dense<0.000000e+00> : vector<256xf32>
    %101 = vector.multi_reduction <add>, %100, %cst_10 [0] : vector<64x256xf32> to vector<256xf32>
    %102 = vector.shape_cast %101 : vector<256xf32> to vector<1x256xf32>
    %103 = arith.addf %87, %102 : vector<1x256xf32>
    %104 = vector.broadcast %94 : vector<64x1xf32> to vector<64x256xf32>
    %105 = arith.mulf %100, %104 : vector<64x256xf32>
    %cst_11 = arith.constant dense<0.000000e+00> : vector<256xf32>
    %106 = vector.multi_reduction <add>, %105, %cst_11 [0] : vector<64x256xf32> to vector<256xf32>
    %107 = vector.shape_cast %106 : vector<256xf32> to vector<1x256xf32>
    %108 = arith.addf %92, %107 : vector<1x256xf32>
    %109 = vector.extract_strided_slice %58 {offsets = [192, 0], sizes = [64, 1], strides = [1, 1]} : vector<256x1xf32> to vector<64x1xf32>
    %110 = vector.extract_strided_slice %54 {offsets = [192, 0], sizes = [64, 1], strides = [1, 1]} : vector<256x1xf32> to vector<64x1xf32>
    %111 = vector.broadcast %109 : vector<64x1xf32> to vector<64x256xf32>
    %112 = vector.broadcast %31 : vector<1x256xf32> to vector<64x256xf32>
    %113 = arith.mulf %111, %112 : vector<64x256xf32>
    %114 = vector.broadcast %50 : vector<1x256xf32> to vector<64x256xf32>
    %115 = arith.subf %113, %114 : vector<64x256xf32>
    %116 = math.exp %115 : vector<64x256xf32>
    %cst_12 = arith.constant dense<0.000000e+00> : vector<256xf32>
    %117 = vector.multi_reduction <add>, %116, %cst_12 [0] : vector<64x256xf32> to vector<256xf32>
    %118 = vector.shape_cast %117 : vector<256xf32> to vector<1x256xf32>
    %119 = arith.addf %103, %118 : vector<1x256xf32>
    %120 = vector.broadcast %110 : vector<64x1xf32> to vector<64x256xf32>
    %121 = arith.mulf %116, %120 : vector<64x256xf32>
    %cst_13 = arith.constant dense<0.000000e+00> : vector<256xf32>
    %122 = vector.multi_reduction <add>, %121, %cst_13 [0] : vector<64x256xf32> to vector<256xf32>
    %123 = vector.shape_cast %122 : vector<256xf32> to vector<1x256xf32>
    %124 = arith.addf %108, %123 : vector<1x256xf32>
    %125 = math.absf %124 : vector<1x256xf32>
    %126 = arith.addf %119, %125 : vector<1x256xf32>
    %127 = arith.divf %124, %126 : vector<1x256xf32>
    %128 = vector.broadcast %127 : vector<1x256xf32> to vector<4x256xf32>
    %129 = arith.mulf %6, %128 : vector<4x256xf32>
    %c0_14 = arith.constant 0 : index
    %c0_15 = arith.constant 0 : index
    %c0_16 = arith.constant 0 : index
    %130 = vector.load %arg3[%c0_14, %c0_15, %c0_16] : memref<1x8x256xf32, #tpu.memory_space<vmem>>, vector<1x4x256xf32>
    %131 = vector.shape_cast %130 : vector<1x4x256xf32> to vector<4x256xf32>
    %132 = vector.shape_cast %129 : vector<4x256xf32> to vector<1x4x256xf32>
    tpu.vector_store %arg3[%c0_14, %c0_15, %c0_16], %132 {strides = array<i32>} : memref<1x8x256xf32, #tpu.memory_space<vmem>>, vector<1x4x256xf32>,
    %c0_17 = arith.constant 0 : index
    %c4_18 = arith.constant 4 : index
    %c0_19 = arith.constant 0 : index
    %133 = vector.load %arg1[%c0_17, %c4_18, %c0_19] : memref<1x8x256xf32, #tpu.memory_space<vmem>>, vector<1x4x256xf32>
    %134 = vector.shape_cast %133 : vector<1x4x256xf32> to vector<4x256xf32>
    %c5_20 = arith.constant 5 : index
    %135 = memref.load %arg2[%c5_20] : memref<9xf32, #tpu.memory_space<smem>>
    %136 = vector.extract_strided_slice %134 {offsets = [0, 0], sizes = [1, 256], strides = [1, 1]} : vector<4x256xf32> to vector<1x256xf32>
    %137 = vector.broadcast %135 : f32 to vector<1x256xf32>
    %138 = arith.mulf %137, %136 : vector<1x256xf32>
    %c6_21 = arith.constant 6 : index
    %139 = memref.load %arg2[%c6_21] : memref<9xf32, #tpu.memory_space<smem>>
    %140 = vector.extract_strided_slice %134 {offsets = [1, 0], sizes = [1, 256], strides = [1, 1]} : vector<4x256xf32> to vector<1x256xf32>
    %141 = vector.broadcast %139 : f32 to vector<1x256xf32>
    %142 = arith.mulf %141, %140 : vector<1x256xf32>
    %143 = arith.addf %138, %142 : vector<1x256xf32>
    %c7_22 = arith.constant 7 : index
    %144 = memref.load %arg2[%c7_22] : memref<9xf32, #tpu.memory_space<smem>>
    %145 = vector.extract_strided_slice %134 {offsets = [2, 0], sizes = [1, 256], strides = [1, 1]} : vector<4x256xf32> to vector<1x256xf32>
    %146 = vector.broadcast %144 : f32 to vector<1x256xf32>
    %147 = arith.mulf %146, %145 : vector<1x256xf32>
    %148 = arith.addf %143, %147 : vector<1x256xf32>
    %c8_23 = arith.constant 8 : index
    %149 = memref.load %arg2[%c8_23] : memref<9xf32, #tpu.memory_space<smem>>
    %150 = vector.extract_strided_slice %134 {offsets = [3, 0], sizes = [1, 256], strides = [1, 1]} : vector<4x256xf32> to vector<1x256xf32>
    %151 = vector.broadcast %149 : f32 to vector<1x256xf32>
    %152 = arith.mulf %151, %150 : vector<1x256xf32>
    %153 = arith.addf %148, %152 : vector<1x256xf32>
    %154 = vector.broadcast %0 : f32 to vector<1x256xf32>
    %155 = arith.addf %153, %154 : vector<1x256xf32>
    %156 = vector.broadcast %1 : f32 to vector<1x256xf32>
    %157 = arith.mulf %156, %155 : vector<1x256xf32>
    %158 = vector.broadcast %2 : f32 to vector<1x256xf32>
    %159 = arith.addf %157, %158 : vector<1x256xf32>
    %cst_24 = arith.constant dense<0xFF800000> : vector<1xf32>
    %160 = vector.multi_reduction <maximumf>, %155, %cst_24 [1] : vector<1x256xf32> to vector<1xf32>
    %161 = vector.shape_cast %160 : vector<1xf32> to vector<1x1xf32>
    %cst_25 = arith.constant dense<0x7F800000> : vector<1xf32>
    %162 = vector.multi_reduction <minimumf>, %155, %cst_25 [1] : vector<1x256xf32> to vector<1xf32>
    %163 = vector.shape_cast %162 : vector<1xf32> to vector<1x1xf32>
    %164 = vector.broadcast %3 : f32 to vector<1x1xf32>
    %165 = arith.mulf %164, %161 : vector<1x1xf32>
    %166 = vector.broadcast %4 : f32 to vector<1x1xf32>
    %167 = arith.addf %165, %166 : vector<1x1xf32>
    %168 = vector.broadcast %3 : f32 to vector<1x1xf32>
    %169 = arith.mulf %168, %163 : vector<1x1xf32>
    %170 = vector.broadcast %4 : f32 to vector<1x1xf32>
    %171 = arith.addf %169, %170 : vector<1x1xf32>
    %172 = arith.maximumf %167, %171 : vector<1x1xf32>
    %173 = arith.minimumf %167, %171 : vector<1x1xf32>
    %174 = vector.broadcast %172 : vector<1x1xf32> to vector<1x256xf32>
    %175 = arith.mulf %159, %174 : vector<1x256xf32>
    %176 = vector.broadcast %173 : vector<1x1xf32> to vector<1x256xf32>
    %177 = arith.mulf %159, %176 : vector<1x256xf32>
    %178 = arith.maximumf %175, %177 : vector<1x256xf32>
    %179 = vector.shape_cast %155 : vector<1x256xf32> to vector<1x256xf32>
    %180 = vector.broadcast %179 : vector<1x256xf32> to vector<8x256xf32>
    %181 = tpu.transpose %180, [1, 0] : vector<8x256xf32> -> vector<256x8xf32>
    %182 = vector.extract_strided_slice %181 {offsets = [0, 0], sizes = [256, 1], strides = [1, 1]} : vector<256x8xf32> to vector<256x1xf32>
    %183 = vector.broadcast %3 : f32 to vector<256x1xf32>
    %184 = arith.mulf %183, %182 : vector<256x1xf32>
    %185 = vector.broadcast %4 : f32 to vector<256x1xf32>
    %186 = arith.addf %184, %185 : vector<256x1xf32>
    %cst_26 = arith.constant 0.000000e+00 : f32
    %187 = vector.broadcast %cst_26 : f32 to vector<1x256xf32>
    %cst_27 = arith.constant 0.000000e+00 : f32
    %188 = vector.broadcast %cst_27 : f32 to vector<1x256xf32>
    %189 = vector.extract_strided_slice %186 {offsets = [0, 0], sizes = [64, 1], strides = [1, 1]} : vector<256x1xf32> to vector<64x1xf32>
    %190 = vector.extract_strided_slice %182 {offsets = [0, 0], sizes = [64, 1], strides = [1, 1]} : vector<256x1xf32> to vector<64x1xf32>
    %191 = vector.broadcast %189 : vector<64x1xf32> to vector<64x256xf32>
    %192 = vector.broadcast %159 : vector<1x256xf32> to vector<64x256xf32>
    %193 = arith.mulf %191, %192 : vector<64x256xf32>
    %194 = vector.broadcast %178 : vector<1x256xf32> to vector<64x256xf32>
    %195 = arith.subf %193, %194 : vector<64x256xf32>
    %196 = math.exp %195 : vector<64x256xf32>
    %cst_28 = arith.constant dense<0.000000e+00> : vector<256xf32>
    %197 = vector.multi_reduction <add>, %196, %cst_28 [0] : vector<64x256xf32> to vector<256xf32>
    %198 = vector.shape_cast %197 : vector<256xf32> to vector<1x256xf32>
    %199 = arith.addf %187, %198 : vector<1x256xf32>
    %200 = vector.broadcast %190 : vector<64x1xf32> to vector<64x256xf32>
    %201 = arith.mulf %196, %200 : vector<64x256xf32>
    %cst_29 = arith.constant dense<0.000000e+00> : vector<256xf32>
    %202 = vector.multi_reduction <add>, %201, %cst_29 [0] : vector<64x256xf32> to vector<256xf32>
    %203 = vector.shape_cast %202 : vector<256xf32> to vector<1x256xf32>
    %204 = arith.addf %188, %203 : vector<1x256xf32>
    %205 = vector.extract_strided_slice %186 {offsets = [64, 0], sizes = [64, 1], strides = [1, 1]} : vector<256x1xf32> to vector<64x1xf32>
    %206 = vector.extract_strided_slice %182 {offsets = [64, 0], sizes = [64, 1], strides = [1, 1]} : vector<256x1xf32> to vector<64x1xf32>
    %207 = vector.broadcast %205 : vector<64x1xf32> to vector<64x256xf32>
    %208 = vector.broadcast %159 : vector<1x256xf32> to vector<64x256xf32>
    %209 = arith.mulf %207, %208 : vector<64x256xf32>
    %210 = vector.broadcast %178 : vector<1x256xf32> to vector<64x256xf32>
    %211 = arith.subf %209, %210 : vector<64x256xf32>
    %212 = math.exp %211 : vector<64x256xf32>
    %cst_30 = arith.constant dense<0.000000e+00> : vector<256xf32>
    %213 = vector.multi_reduction <add>, %212, %cst_30 [0] : vector<64x256xf32> to vector<256xf32>
    %214 = vector.shape_cast %213 : vector<256xf32> to vector<1x256xf32>
    %215 = arith.addf %199, %214 : vector<1x256xf32>
    %216 = vector.broadcast %206 : vector<64x1xf32> to vector<64x256xf32>
    %217 = arith.mulf %212, %216 : vector<64x256xf32>
    %cst_31 = arith.constant dense<0.000000e+00> : vector<256xf32>
    %218 = vector.multi_reduction <add>, %217, %cst_31 [0] : vector<64x256xf32> to vector<256xf32>
    %219 = vector.shape_cast %218 : vector<256xf32> to vector<1x256xf32>
    %220 = arith.addf %204, %219 : vector<1x256xf32>
    %221 = vector.extract_strided_slice %186 {offsets = [128, 0], sizes = [64, 1], strides = [1, 1]} : vector<256x1xf32> to vector<64x1xf32>
    %222 = vector.extract_strided_slice %182 {offsets = [128, 0], sizes = [64, 1], strides = [1, 1]} : vector<256x1xf32> to vector<64x1xf32>
    %223 = vector.broadcast %221 : vector<64x1xf32> to vector<64x256xf32>
    %224 = vector.broadcast %159 : vector<1x256xf32> to vector<64x256xf32>
    %225 = arith.mulf %223, %224 : vector<64x256xf32>
    %226 = vector.broadcast %178 : vector<1x256xf32> to vector<64x256xf32>
    %227 = arith.subf %225, %226 : vector<64x256xf32>
    %228 = math.exp %227 : vector<64x256xf32>
    %cst_32 = arith.constant dense<0.000000e+00> : vector<256xf32>
    %229 = vector.multi_reduction <add>, %228, %cst_32 [0] : vector<64x256xf32> to vector<256xf32>
    %230 = vector.shape_cast %229 : vector<256xf32> to vector<1x256xf32>
    %231 = arith.addf %215, %230 : vector<1x256xf32>
    %232 = vector.broadcast %222 : vector<64x1xf32> to vector<64x256xf32>
    %233 = arith.mulf %228, %232 : vector<64x256xf32>
    %cst_33 = arith.constant dense<0.000000e+00> : vector<256xf32>
    %234 = vector.multi_reduction <add>, %233, %cst_33 [0] : vector<64x256xf32> to vector<256xf32>
    %235 = vector.shape_cast %234 : vector<256xf32> to vector<1x256xf32>
    %236 = arith.addf %220, %235 : vector<1x256xf32>
    %237 = vector.extract_strided_slice %186 {offsets = [192, 0], sizes = [64, 1], strides = [1, 1]} : vector<256x1xf32> to vector<64x1xf32>
    %238 = vector.extract_strided_slice %182 {offsets = [192, 0], sizes = [64, 1], strides = [1, 1]} : vector<256x1xf32> to vector<64x1xf32>
    %239 = vector.broadcast %237 : vector<64x1xf32> to vector<64x256xf32>
    %240 = vector.broadcast %159 : vector<1x256xf32> to vector<64x256xf32>
    %241 = arith.mulf %239, %240 : vector<64x256xf32>
    %242 = vector.broadcast %178 : vector<1x256xf32> to vector<64x256xf32>
    %243 = arith.subf %241, %242 : vector<64x256xf32>
    %244 = math.exp %243 : vector<64x256xf32>
    %cst_34 = arith.constant dense<0.000000e+00> : vector<256xf32>
    %245 = vector.multi_reduction <add>, %244, %cst_34 [0] : vector<64x256xf32> to vector<256xf32>
    %246 = vector.shape_cast %245 : vector<256xf32> to vector<1x256xf32>
    %247 = arith.addf %231, %246 : vector<1x256xf32>
    %248 = vector.broadcast %238 : vector<64x1xf32> to vector<64x256xf32>
    %249 = arith.mulf %244, %248 : vector<64x256xf32>
    %cst_35 = arith.constant dense<0.000000e+00> : vector<256xf32>
    %250 = vector.multi_reduction <add>, %249, %cst_35 [0] : vector<64x256xf32> to vector<256xf32>
    %251 = vector.shape_cast %250 : vector<256xf32> to vector<1x256xf32>
    %252 = arith.addf %236, %251 : vector<1x256xf32>
    %253 = math.absf %252 : vector<1x256xf32>
    %254 = arith.addf %247, %253 : vector<1x256xf32>
    %255 = arith.divf %252, %254 : vector<1x256xf32>
    %256 = vector.broadcast %255 : vector<1x256xf32> to vector<4x256xf32>
    %257 = arith.mulf %134, %256 : vector<4x256xf32>
    %c0_36 = arith.constant 0 : index
    %c4_37 = arith.constant 4 : index
    %c0_38 = arith.constant 0 : index
    %258 = vector.load %arg3[%c0_36, %c4_37, %c0_38] : memref<1x8x256xf32, #tpu.memory_space<vmem>>, vector<1x4x256xf32>
    %259 = vector.shape_cast %258 : vector<1x4x256xf32> to vector<4x256xf32>
    %260 = vector.shape_cast %257 : vector<4x256xf32> to vector<1x4x256xf32>
    tpu.vector_store %arg3[%c0_36, %c4_37, %c0_38], %260 {strides = array<i32>} : memref<1x8x256xf32, #tpu.memory_space<vmem>>, vector<1x4x256xf32>,
    return
  }
  func.func @transform_0(%arg0: i32) -> (i32, i32, i32) {
    %c0_i32 = arith.constant 0 : i32
    %c0_i32_0 = arith.constant 0 : i32
    %c0_i32_1 = arith.constant 0 : i32
    return %arg0, %c0_i32, %c0_i32_0 : i32, i32, i32
  }
  func.func @transform_1(%arg0: i32) -> i32 {
    %c0_i32 = arith.constant 0 : i32
    %c0_i32_0 = arith.constant 0 : i32
    return %c0_i32 : i32
  }
  func.func @transform_2(%arg0: i32) -> (i32, i32, i32) {
    %c0_i32 = arith.constant 0 : i32
    %c0_i32_0 = arith.constant 0 : i32
    %c0_i32_1 = arith.constant 0 : i32
    return %arg0, %c0_i32, %c0_i32_0 : i32, i32, i32
  }
}

</mosaic_0001>

<bundles_post_ra>
// kernel: tpu_custom_call.1
= control target key start
LH: loop header
LB: loop body
LE: loop exit
PB: predicated region body
PF: predicated region fallthrough
CT: control target
= control target key end

     0   :  { %7 = vsyncpa [#allocation3], 0  ;;  %s4136_s0 = inlined_call_operand.hbm [shape: f32[1,8,256], index: 0, kind: input, shape index: {}]   ;;  %s4137_s1 = inlined_call_operand.vmem [shape: f32[9], index: 1, kind: input, shape index: {}]   ;;  %s4138_s2 = inlined_call_operand.hbm [shape: f32[1,8,256], index: 2, kind: output, shape index: {}]  }
   0x1   :  { %8 = vsyncpa [#allocation5], 0 }
   0x2   :  { %9 = vsyncpa [#allocation4], 0  ;;  %s26_s11 = sshll.u32 %s4137_s1, 4  ;;  %s2610_s12 = smov [#allocation2]   ;;  %s27_s11 = int_to_ptr.vmem [resolvable:$true] %s26_s11 }
   0x3   :  { %s16_s13 = sshll.u32 %s2610_s12, 4  ;;  %s2548_s16 = scalar_lea.hbm %s4136_s0, 256  ;;  %s17_s13 = int_to_ptr.vmem [resolvable:$true] %s16_s13 }
   0x4   :  { %p2549_p0 = scmp.ne.s32.totalorder %s4136_s0, %s2548_s16  ;;  %p2552_p1 = scmp.lt.u32.totalorder %s2548_s16, %s4136_s0 }
   0x6   :  { %p2554_p2 = pnand %p2552_p1, %p2549_p0 }
   0x8   :  { %2557 = shalt.err (!%p2554_p2)
}
   0x9   :  { %s2558_s21 = scalar_lea.vmem %s17_s13, 256  ;;  %p2563_p4 = scmp.lt.s32.totalorder %s17_s13, %s17_s13 }
   0xa   :  { %p2559_p3 = scmp.ne.s32.totalorder %s17_s13, %s2558_s21  ;;  %p2564_p5 = scmp.lt.s32.totalorder %s2558_s21, %s2558_s21 }
   0xc   :  { %p2565_p6 = por %p2564_p5, %p2563_p4 }
   0xe   :  { %p2566_p7 = pnand %p2565_p6, %p2559_p3 }
  0x10   :  { %2569 = shalt.err (!%p2566_p7)
}
  0x11   :  { %19 = dma.hbm_to_vmem [thread:$0]  %s4136_s0, 256, %s17_s13, [#allocation3]  }
  0x12   :  { %s2570_s23 = scalar_lea.vmem %s27_s11, 16  ;;  %p2575_p9 = scmp.lt.s32.totalorder %s27_s11, %s27_s11 }
  0x13   :  { %p2571_p8 = scmp.ne.s32.totalorder %s27_s11, %s2570_s23  ;;  %p2576_p10 = scmp.lt.s32.totalorder %s2570_s23, %s2570_s23 }
  0x15   :  { %p2577_p11 = por %p2576_p10, %p2575_p9 }
  0x17   :  { %p2578_p12 = pnand %p2577_p11, %p2571_p8 }
  0x19   :  { %2581 = shalt.err (!%p2578_p12)
}
  0x1a   :  { %s2611_s24 = smov [#allocation6]  }
  0x1b   :  { %29 = dma.vmem_to_smem %s27_s11, 16, %s2611_s24, [#allocation5]  }
  0x1c   :  { %2604 = dma.done.wait [#allocation3], 256  }
  0x1d   :  { %2605 = vsyncadd [#allocation3], 4294967040 }
  0x1e   :  { %2606 = dma.done.wait [#allocation5], 16  }
  0x1f   :  { %2607 = vsyncadd [#allocation5], 4294967280 }
  0x20   :  { %36 = sfence }
  0x21   :  { %s2269_s25 = sld [smem:[#allocation6 + $0x5]]  ;;  %s2270_s26 = sld [smem:[#allocation6 + $0x6]]  ;;  %v118_v0 = vlaneseq  ;;  %v1146_v1 = vld [vmem:[#allocation2] sm:$0xf0]  ;;  %v42_v2 = vld [vmem:[#allocation2] sm:$0xf] }
  0x22   :  { %s2271_s27 = sld [smem:[#allocation6 + $0x7]]  ;;  %s2272_s28 = sld [smem:[#allocation6 + $0x8]]  ;;  %v1147_v3 = vld [vmem:[#allocation2 + $0x8] sm:$0xf0]  ;;  %v43_v47 = vld [vmem:[#allocation2 + $0x8] sm:$0xf] }
  0x23   :  { %s37_s0 = sld [smem:[#allocation6]]  ;;  %v119_v6 = vshrl.u32 %v118_v0, 7  ;;  %v2612_v52 = vmov 0   ;;  %vm93_vm0 = vcmask 1040384   ;;  %vm1194_vm1 = vcmask 1044484   ;;  %s2263_s29 = sld [smem:[#allocation6 + $0x3]] }
  0x24   :  { %s2264_s30 = sld [smem:[#allocation6 + $0x4]]  ;;  %s2261_s3 = sld [smem:[#allocation6 + $0x1]] }
  0x25   :  { %v2644_v35 = vsub.s32 4, %v119_v6  ;;  %v2646_v39 = vsub.s32 0, %v119_v6  ;;  %s2262_s4 = sld [smem:[#allocation6 + $0x2]]  ;;  %s2613_s5 = smov [#allocation7]  }
  0x26   :  { %s2251_s6 = sshll.u32 %s2613_s5, 4  ;;  %s2252_s6 = int_to_ptr.vmem [resolvable:$true] %s2251_s6 }
  0x27   :  { %v1149_v4 = vstv %s2269_s25  ;;  %v1153_v5 = vstv %s2270_s26  ;;  %4171 = vst [vmem:[#allocation11_spill] sm:$0xff] %v2644_v35  ;;  %s2582_s7 = scalar_lea.vmem %s2252_s6, 256  ;;  %p2587_p0 = scmp.lt.s32.totalorder %s2252_s6, %s2252_s6 }
  0x28   :  { %v1150_v7 = vmul.f32 %v1149_v4, %v1146_v1  ;;  %v1151_v8 = vmul.f32 %v1149_v4, %v1147_v3  ;;  %v1154_v9 = vmul.f32 %v1153_v5, %v1146_v1  ;;  %v1165_v10 = vstv %s2271_s27  ;;  %p2583_p13 = scmp.ne.s32.totalorder %s2252_s6, %s2582_s7  ;;  %p2588_p1 = scmp.lt.s32.totalorder %s2582_s7, %s2582_s7 }
  0x29   :  { %v1177_v11 = vstv %s2272_s28  ;;  %v46_v12 = vmul.f32 %v1149_v4, %v42_v2  ;;  %v50_v13 = vmul.f32 %v1153_v5, %v42_v2  ;;  %v1155_v14 = vmul.f32 %v1153_v5, %v1147_v3 }
  0x2a   :  { %v1158_v15 = vrot.slane %v1154_v9, 1  ;;  %v1166_v16 = vmul.f32 %v1165_v10, %v1146_v1  ;;  %v1178_v17 = vmul.f32 %v1177_v11, %v1146_v1  ;;  %v1167_v18 = vmul.f32 %v1165_v10, %v1147_v3  ;;  %p2589_p2 = por %p2588_p1, %p2587_p0 }
  0x2b   :  { %v54_v19 = vrot.slane %v50_v13, 1  ;;  %v62_v20 = vmul.f32 %v1165_v10, %v42_v2  ;;  %v74_v21 = vmul.f32 %v1177_v11, %v42_v2  ;;  %v1179_v24 = vmul.f32 %v1177_v11, %v1147_v3 }
  0x2c   :  { %v1162_v22 = vadd.f32 %v1158_v15, %v1150_v7  ;;  %v1170_v23 = vrot.slane %v1166_v16, 2  ;;  %v1182_v25 = vrot.slane %v1178_v17, 3  ;;  %v1159_v30 = vrot.slane %v1155_v14, 1  ;;  %p2590_p3 = pnand %p2589_p2, %p2583_p13 }
  0x2d   :  { %v58_v26 = vadd.f32 %v54_v19, %v46_v12  ;;  %v66_v27 = vrot.slane %v62_v20, 2  ;;  %v78_v28 = vrot.slane %v74_v21, 3  ;;  %v84_v31 = vstv %s37_s0 }
  0x2e   :  { %v1174_v29 = vadd.f32 %v1170_v23, %v1162_v22  ;;  %v1171_v33 = vrot.slane %v1167_v18, 2  ;;  %v1163_v36 = vadd.f32 %v1159_v30, %v1151_v8  ;;  %v1183_v37 = vrot.slane %v1179_v24, 3 }
  0x2f   :  { %v70_v32 = vadd.f32 %v66_v27, %v58_v26  ;;  %v51_v48 = vmul.f32 %v1153_v5, %v43_v47  ;;  %v47_v49 = vmul.f32 %v1149_v4, %v43_v47  ;;  %v63_v51 = vmul.f32 %v1165_v10, %v43_v47 }
  0x30   :  { %v1186_v34 = vadd.f32 %v1182_v25, %v1174_v29  ;;  %v1175_v41 = vadd.f32 %v1171_v33, %v1163_v36  ;;  %v75_v55 = vmul.f32 %v1177_v11, %v43_v47  ;;  %v2672_v7 = vstv %s2263_s29 }
  0x31   :  { %v82_v38 = vadd.f32 %v78_v28, %v70_v32  ;;  %v55_v50 = vrot.slane %v51_v48, 1  ;;  %v67_v54 = vrot.slane %v63_v51, 2  ;;  %v2675_v10 = vstv %s2264_s30 }
  0x32   :  { %v2648_v40 = vadd.f32 %v1186_v34, %v84_v31  ;;  %v1187_v44 = vadd.f32 %v1183_v37, %v1175_v41  ;;  %v79_v57 = vrot.slane %v75_v55, 3 }
  0x33   :  { %v2650_v42 = vadd.f32 %v84_v31, %v82_v38  ;;  %v59_v53 = vadd.f32 %v55_v50, %v47_v49 }
  0x34   :  { %v1220_v43 = vrot.slane %v2648_v40, %v2644_v35  ;;  %v2656_v46 = vadd.f32 %v1187_v44, %v84_v31  ;;  %v1200_v3 = vsel %vm1194_vm1, %v2648_v40, inf }
  0x35   :  { %v121_v45 = vrot.slane %v2650_v42, %v2646_v39  ;;  %v71_v56 = vadd.f32 %v67_v54, %v59_v53  ;;  %v94_v61 = vsel %vm93_vm0, %v2650_v42, -inf  ;;  %v99_v0 = vsel %vm93_vm0, %v2650_v42, inf }
  0x36   :  { %1225 = vxpose.xlu0.b32.start.end [1/1] (short) %v1220_v43, 128  ;;  %v1201_v4 = vsel %vm1194_vm1, %v2656_v46, inf  ;;  %v1224_v6 = vrot.slane %v2656_v46, %v2644_v35 }
  0x37   :  { %126 = vxpose.xlu1.b32.start.end [1/1] (short) %v121_v45, 128  ;;  %v83_v58 = vadd.f32 %v79_v57, %v71_v56  ;;  %v1202_v5 = vmin.f32 %v1200_v3, %v1201_v4 }
  0x39   :  { %v2658_v59 = vadd.f32 %v84_v31, %v83_v58 }
  0x3b   :  { %v125_v60 = vrot.slane %v2658_v59, %v2646_v39  ;;  %v95_v62 = vsel %vm93_vm0, %v2658_v59, -inf  ;;  %v100_v1 = vsel %vm93_vm0, %v2658_v59, inf }
  0x3c   :  { %v96_v63 = vmax.f32 %v94_v61, %v95_v62  ;;  %v101_v2 = vmin.f32 %v99_v0, %v100_v1 }
  0x5f   :  { %2278 = vset.pattern.permute.xlu0 %v2612_v52 }
  0x74   :  { %158 = vxpose.xlu1.b32.start.end [1/1] (short) %v125_v60, 128 }
  0x9f   :  { %97 = vmax.xlane.f32.xlu0 %v96_v63 }
  0xa3   :  { %102 = vmin.xlane.f32.xlu0 %v101_v2 }
  0xa7   :  { %1203 = vmin.xlane.f32.xlu0 %v1202_v5 }
  0xb1   :  { %1257 = vxpose.xlu1.b32.start.end [1/1] (short) %v1224_v6, 128 }
  0xb6   :  { %v2688_v25 = vpop.trf.xlu0 }
  0xb7   :  { %v142_v8 = vpop.trf.xlu1 }
  0xb8   :  { %v190_v9 = vmul.f32 %v142_v8, %v2672_v7 }
  0xba   :  { %v222_v12 = vadd.f32 %v190_v9, %v2675_v10  ;;  %v2693_v31 = vpop.trf.xlu0 }
  0xbb   :  { %v143_v11 = vpop.trf.xlu1 }
  0xbc   :  { %v191_v13 = vmul.f32 %v143_v11, %v2672_v7 }
  0xbd   :  { %256 = vperm.xlu0 %2278, %v222_v12  }
  0xbe   :  { %v223_v15 = vadd.f32 %v191_v13, %v2675_v10  ;;  %v2698_v34 = vpop.trf.xlu0  ;;  %v1195_v13 = vsel %vm1194_vm1, %v2648_v40, -inf }
  0xbf   :  { %v144_v14 = vpop.trf.xlu1 }
  0xc0   :  { %v192_v16 = vmul.f32 %v144_v14, %v2672_v7 }
  0xc1   :  { %261 = vperm.xlu0 %2278, %v223_v15  }
  0xc2   :  { %v224_v18 = vadd.f32 %v192_v16, %v2675_v10  ;;  %v2704_v38 = vpop.trf.xlu0 }
  0xc3   :  { %v145_v17 = vpop.trf.xlu1 }
  0xc4   :  { %v193_v19 = vmul.f32 %v145_v17, %v2672_v7 }
  0xc5   :  { %266 = vperm.xlu0 %2278, %v224_v18  }
  0xc6   :  { %v225_v21 = vadd.f32 %v193_v19, %v2675_v10  ;;  %v2708_v43 = vpop.trf.xlu0 }
  0xc7   :  { %v146_v20 = vpop.trf.xlu1 }
  0xc8   :  { %v194_v22 = vmul.f32 %v146_v20, %v2672_v7 }
  0xc9   :  { %271 = vperm.xlu0 %2278, %v225_v21  }
  0xca   :  { %v226_v24 = vadd.f32 %v194_v22, %v2675_v10  ;;  %v2714_v47 = vpop.trf.xlu0 }
  0xcb   :  { %v2685_v23 = vpop.trf.xlu1  ;;  %4172 = vst [vmem:[#allocation12_spill] sm:$0xff] %v2714_v47 }
  0xcd   :  { %276 = vperm.xlu0 %2278, %v226_v24  }
  0xce   :  { %v2719_v49 = vpop.trf.xlu0 }
  0xcf   :  { %v148_v26 = vpop.trf.xlu1  ;;  %2279 = vset.pattern.permute.xlu1 %v2612_v52  ;;  %4173 = vst [vmem:[#allocation13_spill] sm:$0xff] %v2719_v49 }
  0xd0   :  { %v196_v27 = vmul.f32 %v148_v26, %v2672_v7 }
  0xd2   :  { %v228_v28 = vadd.f32 %v196_v27, %v2675_v10  ;;  %v2730_v55 = vpop.trf.xlu0 }
  0xd3   :  { %v149_v29 = vpop.trf.xlu1 }
  0xd4   :  { %v197_v30 = vmul.f32 %v149_v29, %v2672_v7  ;;  %286 = vperm.xlu0 %2278, %v228_v28   ;;  %v195_v28 = vmul.f32 %v2685_v23, %v2672_v7 }
  0xd6   :  { %v229_v32 = vadd.f32 %v197_v30, %v2675_v10  ;;  %v2737_v60 = vpop.trf.xlu0 }
  0xd7   :  { %v2696_v33 = vpop.trf.xlu1 }
  0xd8   :  { %291 = vperm.xlu0 %2278, %v229_v32   ;;  %v198_v51 = vmul.f32 %v2696_v33, %v2672_v7  ;;  %v227_v32 = vadd.f32 %v195_v28, %v2675_v10 }
  0xda   :  { %v230_v54 = vadd.f32 %v198_v51, %v2675_v10  ;;  %v2749_v3 = vpop.trf.xlu0 }
  0xdb   :  { %v2700_v36 = vpop.trf.xlu1 }
  0xdc   :  { %404 = vperm.xlu0 %2278, %v142_v8   ;;  %v199_v53 = vmul.f32 %v2700_v36, %v2672_v7 }
  0xde   :  { %v231_v58 = vadd.f32 %v199_v53, %v2675_v10  ;;  %v2756_v8 = vpop.trf.xlu0 }
  0xdf   :  { %v2702_v37 = vpop.trf.xlu1 }
  0xe0   :  { %409 = vperm.xlu0 %2278, %v143_v11   ;;  %v200_v57 = vmul.f32 %v2702_v37, %v2672_v7 }
  0xe2   :  { %v232_v63 = vadd.f32 %v200_v57, %v2675_v10  ;;  %v2772_v19 = vpop.trf.xlu0 }
  0xe3   :  { %v2706_v41 = vpop.trf.xlu1  ;;  %4174 = vst [vmem:[#allocation14_spill] sm:$0xff] %v2772_v19 }
  0xe4   :  { %414 = vperm.xlu0 %2278, %v144_v14   ;;  %v201_v62 = vmul.f32 %v2706_v41, %v2672_v7  ;;  %v1196_v14 = vsel %vm1194_vm1, %v2656_v46, -inf }
  0xe6   :  { %v233_v2 = vadd.f32 %v201_v62, %v2675_v10  ;;  %v2777_v22 = vpop.trf.xlu0 }
  0xe7   :  { %v2710_v44 = vpop.trf.xlu1  ;;  %4175 = vst [vmem:[#allocation15_spill] sm:$0xff] %v2777_v22 }
  0xe8   :  { %419 = vperm.xlu0 %2278, %v145_v17   ;;  %v202_v1 = vmul.f32 %v2710_v44, %v2672_v7  ;;  %v1197_v17 = vmax.f32 %v1195_v13, %v1196_v14 }
  0xea   :  { %v234_v6 = vadd.f32 %v202_v1, %v2675_v10  ;;  %v2784_v27 = vpop.trf.xlu0 }
  0xeb   :  { %v2712_v45 = vpop.trf.xlu1  ;;  %4176 = vst [vmem:[#allocation16_spill] sm:$0xff] %v2784_v27 }
  0xec   :  { %424 = vperm.xlu0 %2278, %v146_v20   ;;  %v203_v5 = vmul.f32 %v2712_v45, %v2672_v7 }
  0xee   :  { %v235_v12 = vadd.f32 %v203_v5, %v2675_v10  ;;  %v2791_v30 = vpop.trf.xlu0 }
  0xef   :  { %v2716_v48 = vpop.trf.xlu1 }
  0xf0   :  { %429 = vperm.xlu0 %2278, %v2685_v23   ;;  %v204_v11 = vmul.f32 %v2716_v48, %v2672_v7 }
  0xf2   :  { %v236_v18 = vadd.f32 %v204_v11, %v2675_v10 }
  0xf3   :  { %v2721_v50 = vpop.trf.xlu1 }
  0xf4   :  { %434 = vperm.xlu0 %2278, %v148_v26   ;;  %v205_v16 = vmul.f32 %v2721_v50, %v2672_v7 }
  0xf6   :  { %v237_v21 = vadd.f32 %v205_v16, %v2675_v10 }
  0xf7   :  { %v2725_v52 = vpop.trf.xlu1 }
  0xf8   :  { %439 = vperm.xlu0 %2278, %v149_v29   ;;  %v206_v23 = vmul.f32 %v2725_v52, %v2672_v7 }
  0xfb   :  { %v2732_v56 = vpop.trf.xlu1 }
  0xfc   :  { %488 = vperm.xlu0 %2278, %v230_v54  }
  0xff   :  { %v2739_v61 = vpop.trf.xlu1 }
 0x100   :  { %493 = vperm.xlu0 %2278, %v231_v58   ;;  %v208_v54 = vmul.f32 %v2739_v61, %v2672_v7 }
 0x102   :  { %v240_v57 = vadd.f32 %v208_v54, %v2675_v10 }
 0x103   :  { %v2744_v0 = vpop.trf.xlu1 }
 0x104   :  { %498 = vperm.xlu0 %2278, %v232_v63  }
 0x107   :  { %v2751_v4 = vpop.trf.xlu1 }
 0x108   :  { %503 = vperm.xlu0 %2278, %v233_v2   ;;  %v210_v58 = vmul.f32 %v2751_v4, %v2672_v7 }
 0x10a   :  { %v242_v2 = vadd.f32 %v210_v58, %v2675_v10 }
 0x10b   :  { %v2758_v9 = vpop.trf.xlu1 }
 0x10c   :  { %508 = vperm.xlu0 %2278, %v234_v6   ;;  %v211_v1 = vmul.f32 %v2758_v9, %v2672_v7 }
 0x10e   :  { %v243_v13 = vadd.f32 %v211_v1, %v2675_v10 }
 0x10f   :  { %v2767_v15 = vpop.trf.xlu1 }
 0x110   :  { %513 = vperm.xlu0 %2278, %v235_v12  }
 0x113   :  { %v2774_v20 = vpop.trf.xlu1 }
 0x114   :  { %1198 = vmax.xlane.f32.xlu1 %v1197_v17  ;;  %518 = vperm.xlu0 %2278, %v236_v18   ;;  %v213_v11 = vmul.f32 %v2774_v20, %v2672_v7 }
 0x116   :  { %v245_v14 = vadd.f32 %v213_v11, %v2675_v10 }
 0x117   :  { %v2779_v24 = vpop.trf.xlu1 }
 0x118   :  { %523 = vperm.xlu0 %2278, %v237_v21  }
 0x11b   :  { %v2781_v26 = vpop.trf.xlu1 }
 0x11c   :  { %620 = vperm.xlu0 %2278, %v2696_v33   ;;  %v2798_v33 = vpop.trf.xlu0 }
 0x11d   :  { %4177 = vst [vmem:[#allocation17_spill] sm:$0xff] %v2798_v33 }
 0x11f   :  { %v2788_v29 = vpop.trf.xlu1 }
 0x120   :  { %625 = vperm.xlu0 %2278, %v2700_v36   ;;  %v207_v36 = vmul.f32 %v2732_v56, %v2672_v7 }
 0x123   :  { %v2795_v51 = vpop.trf.xlu1 }
 0x124   :  { %630 = vperm.xlu0 %2278, %v2702_v37  }
 0x125   :  { %281 = vperm.xlu1 %2279, %v227_v32  }
 0x127   :  { %v2803_v53 = vpop.trf.xlu1 }
 0x128   :  { %635 = vperm.xlu0 %2278, %v2706_v41   ;;  %v238_v41 = vadd.f32 %v206_v23, %v2675_v10  ;;  %v218_v54 = vmul.f32 %v2803_v53, %v2672_v7 }
 0x129   :  { %640 = vperm.xlu1 %2279, %v2710_v44  }
 0x12b   :  { %v2815_v44 = vpop.trf.xlu1 }
 0x12c   :  { %645 = vperm.xlu0 %2278, %v2712_v45   ;;  %v2809_v37 = vpop.xlane.xlu0 %97  ;;  %v209_v45 = vmul.f32 %v2744_v0, %v2672_v7  ;;  %v219_v58 = vmul.f32 %v2815_v44, %v2672_v7 }
 0x12d   :  { %650 = vperm.xlu1 %2279, %v2716_v48   ;;  %v239_v48 = vadd.f32 %v207_v36, %v2675_v10  ;;  %v214_v36 = vmul.f32 %v2779_v24, %v2672_v7 }
 0x12e   :  { %v241_v63 = vadd.f32 %v209_v45, %v2675_v10 }
 0x12f   :  { %v2831_v5 = vpop.trf.xlu1 }
 0x130   :  { %655 = vperm.xlu0 %2278, %v2721_v50   ;;  %v2823_v62 = vpop.xlane.xlu0 %102  ;;  %v212_v50 = vmul.f32 %v2767_v15, %v2672_v7 }
 0x131   :  { %704 = vperm.xlu1 %2279, %v238_v41  }
 0x132   :  { %v244_v12 = vadd.f32 %v212_v50, %v2675_v10  ;;  %v250_v50 = vadd.f32 %v218_v54, %v2675_v10  ;;  %v2914_v54 = vstv %s2262_s4 }
 0x133   :  { %v2842_v17 = vpop.trf.xlu1 }
 0x134   :  { %709 = vperm.xlu0 %2278, %v239_v48   ;;  %v2833_v6 = vpop.xlane.xlu0 %1203  ;;  %v221_v1 = vmul.f32 %v2842_v17, %v2672_v7 }
 0x135   :  { %714 = vperm.xlu1 %2279, %v240_v57  }
 0x137   :  { %v2847_v21 = vpop.trf.xlu1 }
 0x138   :  { %719 = vperm.xlu0 %2278, %v241_v63   ;;  %4178 = vst [vmem:[#allocation18_spill] sm:$0xff] %v2847_v21 }
 0x139   :  { %724 = vperm.xlu1 %2279, %v242_v2  }
 0x13b   :  { %v2853_v32 = vpop.trf.xlu1 }
 0x13c   :  { %729 = vperm.xlu0 %2278, %v243_v13   ;;  %v2840_v16 = vpop.permute.xlu0 %256  ;;  %4179 = vst [vmem:[#allocation19_spill] sm:$0xff] %v2853_v32 }
 0x13d   :  { %734 = vperm.xlu1 %2279, %v244_v12   ;;  %v251_v12 = vadd.f32 %v219_v58, %v2675_v10 }
 0x140   :  { %739 = vperm.xlu0 %2278, %v245_v14   ;;  %v2844_v18 = vpop.permute.xlu0 %261  ;;  %v253_v14 = vadd.f32 %v221_v1, %v2675_v10  ;;  %v1290_v1 = vmul.f32 %v2693_v31, %v2672_v7 }
 0x141   :  { %836 = vperm.xlu1 %2279, %v2725_v52   ;;  %v2863_v52 = vpop.trf.xlu1 }
 0x142   :  { %4180 = vst [vmem:[#allocation20_spill] sm:$0xff] %v2863_v52 }
 0x144   :  { %841 = vperm.xlu0 %2278, %v2732_v56   ;;  %v2850_v28 = vpop.permute.xlu0 %266  ;;  %v215_v56 = vmul.f32 %v2781_v26, %v2672_v7 }
 0x145   :  { %846 = vperm.xlu1 %2279, %v2739_v61   ;;  %v246_v61 = vadd.f32 %v214_v36, %v2675_v10  ;;  %v2881_v48 = vpop.trf.xlu1  ;;  %v108_v36 = vmul.f32 %v2672_v7, %v2823_v62 }
 0x146   :  { %v247_v41 = vadd.f32 %v215_v56, %v2675_v10  ;;  %4181 = vst [vmem:[#allocation21_spill] sm:$0xff] %v2881_v48  ;;  %v2902_v56 = vstv %s2261_s3 }
 0x148   :  { %851 = vperm.xlu0 %2278, %v2744_v0   ;;  %v2857_v23 = vpop.permute.xlu0 %271  ;;  %v216_v0 = vmul.f32 %v2788_v29, %v2672_v7 }
 0x149   :  { %856 = vperm.xlu1 %2279, %v2751_v4   ;;  %v2894_v11 = vpop.trf.xlu1 }
 0x14a   :  { %4182 = vst [vmem:[#allocation22_spill] sm:$0xff] %v2894_v11 }
 0x14c   :  { %861 = vperm.xlu0 %2278, %v2758_v9   ;;  %v2870_v4 = vpop.permute.xlu0 %276  ;;  %v217_v9 = vmul.f32 %v2795_v51, %v2672_v7 }
 0x14d   :  { %866 = vperm.xlu1 %2279, %v2767_v15   ;;  %v248_v15 = vadd.f32 %v216_v0, %v2675_v10 }
 0x14e   :  { %v249_v57 = vadd.f32 %v217_v9, %v2675_v10  ;;  %v88_v9 = vmul.f32 %v2902_v56, %v2650_v42 }
 0x150   :  { %871 = vperm.xlu0 %2278, %v2774_v20   ;;  %v220_v20 = vmul.f32 %v2831_v5, %v2672_v7 }
 0x151   :  { %920 = vperm.xlu1 %2279, %v246_v61   ;;  %v105_v61 = vmul.f32 %v2672_v7, %v2809_v37 }
 0x152   :  { %v252_v2 = vadd.f32 %v220_v20, %v2675_v10  ;;  %v89_v20 = vmul.f32 %v2902_v56, %v2658_v59 }
 0x153   :  { %v2879_v45 = vpop.permute.xlu0 %286  ;;  %v107_v62 = vadd.f32 %v2675_v10, %v105_v61 }
 0x154   :  { %925 = vperm.xlu0 %2278, %v247_v41   ;;  %v2908_v41 = vpop.trf.xlu1  ;;  %v92_v59 = vadd.f32 %v2914_v54, %v89_v20 }
 0x155   :  { %930 = vperm.xlu1 %2279, %v248_v15   ;;  %4185 = vst [vmem:[#allocation25_spill] sm:$0xff] %v2908_v41  ;;  %v109_v15 = vadd.f32 %v108_v36, %v2675_v10  ;;  %v1295_v36 = vmul.f32 %v2719_v49, %v2672_v7 }
 0x157   :  { %v2889_v63 = vpop.permute.xlu0 %291  ;;  %v110_v58 = vmax.f32 %v107_v62, %v109_v15 }
 0x158   :  { %935 = vperm.xlu0 %2278, %v249_v57   ;;  %v91_v57 = vadd.f32 %v2914_v54, %v88_v9  ;;  %v2924_v42 = vpop.trf.xlu1 }
 0x159   :  { %940 = vperm.xlu1 %2279, %v250_v50   ;;  %v111_v50 = vmin.f32 %v107_v62, %v109_v15  ;;  %4187 = vst [vmem:[#allocation27_spill] sm:$0xff] %v2924_v42  ;;  %v2947_v62 = vrot.slane %v92_v59, %v2646_v39 }
 0x15a   :  { %v112_v61 = vmul.f32 %v110_v58, %v91_v57  ;;  %v2950_v20 = vrot.slane %v91_v57, %v2646_v39 }
 0x15b   :  { %v2897_v13 = vpop.permute.xlu0 %404  ;;  %v114_v9 = vmul.f32 %v111_v50, %v91_v57  ;;  %v1297_v57 = vmul.f32 %v2737_v60, %v2672_v7 }
 0x15c   :  { %4183 = vst [vmem:[#allocation23_spill] sm:$0xff] %v2897_v13  ;;  %945 = vperm.xlu0 %2278, %v251_v12   ;;  %v1292_v12 = vmul.f32 %v2704_v38, %v2672_v7  ;;  %v2957_v49 = vpop.trf.xlu1 }
 0x15d   :  { %950 = vperm.xlu1 %2279, %v252_v2   ;;  %4189 = vst [vmem:[#allocation29_spill] sm:$0xff] %v2957_v49 }
 0x15f   :  { %v2906_v0 = vpop.permute.xlu0 %409 }
 0x160   :  { %4184 = vst [vmem:[#allocation24_spill] sm:$0xff] %v2906_v0  ;;  %955 = vperm.xlu0 %2278, %v253_v14   ;;  %v1294_v14 = vmul.f32 %v2714_v47, %v2672_v7  ;;  %v115_v0 = vmul.f32 %v111_v50, %v92_v59  ;;  %v1298_v50 = vmul.f32 %v2749_v3, %v2672_v7 }
 0x161   :  { %1052 = vperm.xlu1 %2279, %v2779_v24   ;;  %v1289_v24 = vmul.f32 %v2688_v25, %v2672_v7 }
 0x163   :  { %v2919_v37 = vpop.permute.xlu0 %414  ;;  %v1321_v15 = vadd.f32 %v1289_v24, %v2675_v10  ;;  %v1324_v24 = vadd.f32 %v1292_v12, %v2675_v10  ;;  %v1300_v12 = vmul.f32 %v2772_v19, %v2672_v7  ;;  %v2994_v19 = vadd.f32 %v1297_v57, %v2675_v10 }
 0x164   :  { %4186 = vst [vmem:[#allocation26_spill] sm:$0xff] %v2919_v37  ;;  %1057 = vperm.xlu0 %2278, %v2781_v26   ;;  %v1291_v26 = vmul.f32 %v2698_v34, %v2672_v7  ;;  %v113_v37 = vmul.f32 %v110_v58, %v92_v59  ;;  %v2971_v58 = vadd.f32 %v1295_v36, %v2675_v10 }
 0x165   :  { %1062 = vperm.xlu1 %2279, %v2788_v29   ;;  %v1293_v29 = vmul.f32 %v2708_v43, %v2672_v7  ;;  %v116_v59 = vmax.f32 %v112_v61, %v114_v9  ;;  %v1303_v36 = vmul.f32 %v2791_v30, %v2672_v7  ;;  %v303_v57 = vmul.f32 %v2947_v62, %v2840_v16 }
 0x166   :  { %v117_v61 = vmax.f32 %v113_v37, %v115_v0  ;;  %v3004_v0 = vadd.f32 %v1298_v50, %v2675_v10 }
 0x167   :  { %v2931_v2 = vpop.permute.xlu0 %419  ;;  %v2962_v47 = vadd.f32 %v1293_v29, %v2675_v10  ;;  %v1302_v29 = vmul.f32 %v2784_v27, %v2672_v7  ;;  %v304_v27 = vmul.f32 %v2950_v20, %v2844_v18  ;;  %v3007_v37 = vrot.slane %v116_v59, %v2646_v39 }
 0x168   :  { %4188 = vst [vmem:[#allocation28_spill] sm:$0xff] %v2931_v2  ;;  %1067 = vperm.xlu0 %2278, %v2795_v51   ;;  %v1322_v51 = vadd.f32 %v1290_v1, %v2675_v10  ;;  %v1296_v2 = vmul.f32 %v2730_v55, %v2672_v7  ;;  %v2968_v1 = vadd.f32 %v1294_v14, %v2675_v10 }
 0x169   :  { %1072 = vperm.xlu1 %2279, %v2803_v53   ;;  %v1323_v53 = vadd.f32 %v1291_v26, %v2675_v10  ;;  %v1299_v26 = vmul.f32 %v2756_v8, %v2672_v7  ;;  %v3025_v59 = vadd.f32 %v1302_v29, %v2675_v10  ;;  %v306_v29 = vmul.f32 %v2950_v20, %v2850_v28 }
 0x16a   :  { %v2985_v14 = vadd.f32 %v1296_v2, %v2675_v10  ;;  %v1190_v2 = vmul.f32 %v2648_v40, %v2902_v56  ;;  %v3019_v40 = vadd.f32 %v1300_v12, %v2675_v10 }
 0x16b   :  { %v2955_v13 = vpop.permute.xlu0 %424 }
 0x16c   :  { %1077 = vperm.xlu0 %2278, %v2815_v44   ;;  %v1301_v44 = vmul.f32 %v2777_v22, %v2672_v7  ;;  %v1304_v22 = vmul.f32 %v2798_v33, %v2672_v7  ;;  %v1191_v33 = vmul.f32 %v2656_v46, %v2902_v56  ;;  %v305_v56 = vmul.f32 %v2947_v62, %v2844_v18 }
 0x16d   :  { %1082 = vperm.xlu1 %2279, %v2831_v5   ;;  %v302_v5 = vmul.f32 %v2950_v20, %v2840_v16  ;;  %v3028_v16 = vadd.f32 %v1303_v36, %v2675_v10  ;;  %v3045_v36 = vadd.f32 %v1190_v2, %v2914_v54  ;;  %v307_v18 = vmul.f32 %v2947_v62, %v2850_v28 }
 0x16e   :  { %v3022_v50 = vadd.f32 %v1301_v44, %v2675_v10  ;;  %v3039_v12 = vadd.f32 %v1304_v22, %v2675_v10  ;;  %v328_v44 = vsub.f32 %v304_v27, %v3007_v37  ;;  %v3053_v22 = vadd.f32 %v1191_v33, %v2914_v54 }
 0x16f   :  { %v2991_v9 = vpop.permute.xlu0 %429  ;;  %v326_v46 = vsub.f32 %v302_v5, %v3007_v37  ;;  %v308_v27 = vmul.f32 %v2950_v20, %v2857_v23  ;;  %v1306_v5 = vmul.f32 %v2853_v32, %v2672_v7  ;;  %v309_v33 = vmul.f32 %v2947_v62, %v2857_v23 }
 0x170   :  { %4190 = vst [vmem:[#allocation30_spill] sm:$0xff] %v2991_v9  ;;  %1087 = vperm.xlu0 %2278, %v2842_v17   ;;  %v3011_v9 = vpop.trf.xlu1  ;;  %v3016_v17 = vadd.f32 %v1299_v26, %v2675_v10  ;;  %v330_v32 = vsub.f32 %v306_v29, %v3007_v37  ;;  %v314_v29 = vmul.f32 %v2950_v20, %v2879_v45 }
 0x171   :  { %1360 = vperm.xlu1 %2279, %v1322_v51   ;;  %4191 = vst [vmem:[#allocation31_spill] sm:$0xff] %v3011_v9  ;;  %v3031_v51 = vrot.slane %v117_v61, %v2646_v39  ;;  %v1207_v39 = vmul.f32 %v2833_v6, %v2672_v7  ;;  %v3063_v6 = vrot.slane %v3045_v36, %v2644_v35  ;;  %v342_v2 = vmul.f32 1.442695, %v326_v46 }
 0x172   :  { %v1307_v46 = vmul.f32 %v2863_v52, %v2672_v7 }
 0x173   :  { %v3036_v26 = vpop.permute.xlu0 %434  ;;  %v327_v61 = vsub.f32 %v303_v57, %v3031_v51  ;;  %4192 = vst [vmem:[#allocation32_spill] sm:$0xff] %v3063_v6  ;;  %v329_v28 = vsub.f32 %v305_v56, %v3031_v51  ;;  %v3074_v57 = vrot.slane %v3053_v22, %v2644_v35  ;;  %v310_v6 = vmul.f32 %v2950_v20, %v2870_v4 }
 0x174   :  { %1355 = vperm.xlu0 %2278, %v1321_v15   ;;  %v1305_v15 = vmul.f32 %v2847_v21, %v2672_v7  ;;  %v346_v21 = vmul.f32 1.442695, %v328_v44  ;;  %v3082_v23 = vadd.f32 %v1207_v39, %v2675_v10  ;;  %v311_v35 = vmul.f32 %v2947_v62, %v2870_v4 }
 0x175   :  { %1365 = vperm.xlu1 %2279, %v1323_v53   ;;  %v3070_v53 = vpop.trf.xlu1  ;;  %4195 = vst [vmem:[#allocation35_spill] sm:$0xff] %v3074_v57  ;;  %v344_v56 = vmul.f32 1.442695, %v327_v61  ;;  %v332_v44 = vsub.f32 %v308_v27, %v3007_v37  ;;  %2280 = vpow2.f32 %v342_v2  ;;  %v348_v39 = vmul.f32 1.442695, %v329_v28 }
 0x176   :  { %4194 = vst [vmem:[#allocation34_spill] sm:$0xff] %v3070_v53  ;;  %v3092_v57 = vadd.f32 %v1305_v15, %v2675_v10  ;;  %v333_v61 = vsub.f32 %v309_v33, %v3031_v51  ;;  %v315_v4 = vmul.f32 %v2947_v62, %v2879_v45  ;;  %2282 = vpow2.f32 %v346_v21 }
 0x177   :  { %v3068_v54 = vpop.permute.xlu0 %439  ;;  %v334_v27 = vsub.f32 %v310_v6, %v3007_v37  ;;  %v3102_v52 = vadd.f32 %v1307_v46, %v2675_v10  ;;  %2284 = vpow2.f32 %v344_v56  ;;  %v316_v2 = vmul.f32 %v2950_v20, %v2889_v63 }
 0x178   :  { %4193 = vst [vmem:[#allocation33_spill] sm:$0xff] %v3068_v54  ;;  %1370 = vperm.xlu0 %2278, %v1324_v24   ;;  %v331_v54 = vsub.f32 %v307_v18, %v3031_v51  ;;  %v3095_v24 = vadd.f32 %v1306_v5, %v2675_v10  ;;  %v335_v5 = vsub.f32 %v311_v35, %v3031_v51  ;;  %v354_v21 = vmul.f32 1.442695, %v332_v44 }
 0x179   :  { %1375 = vperm.xlu1 %2279, %v2962_v47   ;;  %v350_v47 = vmul.f32 1.442695, %v330_v32  ;;  %v3109_v45 = vpop.trf.xlu1  ;;  %v338_v32 = vsub.f32 %v314_v29, %v3007_v37  ;;  %v317_v6 = vmul.f32 %v2947_v62, %v2889_v63  ;;  %2286 = vpow2.f32 %v348_v39 }
 0x17a   :  { %v352_v15 = vmul.f32 1.442695, %v331_v54  ;;  %4196 = vst [vmem:[#allocation36_spill] sm:$0xff] %v3109_v45  ;;  %v356_v28 = vmul.f32 1.442695, %v333_v61  ;;  %v339_v35 = vsub.f32 %v315_v4, %v3031_v51  ;;  %v1309_v46 = vmul.f32 %v2894_v11, %v2672_v7 }
 0x17b   :  { %v489_v18 = vpop.permute.xlu0 %488  ;;  %2288 = vpow2.f32 %v350_v47  ;;  %v360_v63 = vmul.f32 1.442695, %v335_v5  ;;  %v340_v44 = vsub.f32 %v316_v2, %v3007_v37  ;;  %v366_v39 = vmul.f32 1.442695, %v338_v32 }
 0x17c   :  { %1380 = vperm.xlu0 %2278, %v2968_v1   ;;  %v1308_v1 = vmul.f32 %v2881_v48, %v2672_v7  ;;  %v526_v33 = vmul.f32 %v489_v18, %v2950_v20  ;;  %v527_v56 = vmul.f32 %v489_v18, %v2947_v62  ;;  %2290 = vpow2.f32 %v352_v15 }
 0x17d   :  { %1385 = vperm.xlu1 %2279, %v2971_v58   ;;  %v358_v58 = vmul.f32 1.442695, %v334_v27  ;;  %2292 = vpow2.f32 %v354_v21  ;;  %v341_v61 = vsub.f32 %v317_v6, %v3031_v51  ;;  %v368_v47 = vmul.f32 1.442695, %v339_v35  ;;  %v3131_v15 = vpop.trf.xlu1 }
 0x17e   :  { %2294 = vpow2.f32 %v356_v28  ;;  %v3128_v18 = vadd.f32 %v1308_v1, %v2675_v10  ;;  %4198 = vst [vmem:[#allocation38_spill] sm:$0xff] %v3131_v15  ;;  %v543_v5 = vsub.f32 %v527_v56, %v3031_v51  ;;  %v370_v32 = vmul.f32 1.442695, %v340_v44 }
 0x17f   :  { %v494_v54 = vpop.permute.xlu0 %493  ;;  %2296 = vpow2.f32 %v358_v58  ;;  %v3137_v21 = vpop.eup %2280  ;;  %v1310_v6 = vmul.f32 %v2908_v41, %v2672_v7  ;;  %v372_v35 = vmul.f32 1.442695, %v341_v61  ;;  %v1311_v58 = vmul.f32 %v2924_v42, %v2672_v7 }
 0x180   :  { %1390 = vperm.xlu0 %2278, %v2985_v14   ;;  %v528_v29 = vmul.f32 %v494_v54, %v2950_v20  ;;  %v529_v4 = vmul.f32 %v494_v54, %v2947_v62  ;;  %4197 = vst [vmem:[#allocation37_spill] sm:$0xff] %v3128_v18  ;;  %v542_v14 = vsub.f32 %v526_v33, %v3007_v37  ;;  %2298 = vpow2.f32 %v360_v63  ;;  %v3143_v28 = vpop.eup %2282 }
 0x181   :  { %1503 = vperm.xlu1 %2279, %v2688_v25   ;;  %2300 = vpow2.f32 %v366_v39  ;;  %v3146_v33 = vadd.f32 %v1309_v46, %v2675_v10  ;;  %v3149_v54 = vpop.eup %2284 }
 0x182   :  { %v544_v1 = vsub.f32 %v528_v29, %v3007_v37  ;;  %2302 = vpow2.f32 %v368_v47  ;;  %v558_v56 = vmul.f32 1.442695, %v542_v14  ;;  %v3163_v47 = vadd.f32 %v1310_v6, %v2675_v10 }
 0x183   :  { %v499_v27 = vpop.permute.xlu0 %498  ;;  %4199 = vst [vmem:[#allocation39_spill] sm:$0xff] %v3146_v33  ;;  %v3158_v61 = vpop.eup %2286  ;;  %2304 = vpow2.f32 %v370_v32  ;;  %v3175_v32 = vadd.f32 %v1311_v58, %v2675_v10  ;;  %v1312_v6 = vmul.f32 %v2957_v49, %v2672_v7  ;;  %v4204_v49 = vld [vmem:[#allocation13_spill] sm:$0xff] }
 0x184   :  { %v530_v25 = vmul.f32 %v499_v27, %v2950_v20  ;;  %v531_v2 = vmul.f32 %v499_v27, %v2947_v62  ;;  %1508 = vperm.xlu0 %2278, %v2693_v31   ;;  %v545_v31 = vsub.f32 %v529_v4, %v3031_v51  ;;  %v374_v4 = vadd.f32 %v3143_v28, %v3137_v21  ;;  %v3166_v27 = vpop.trf.xlu1 }
 0x185   :  { %1513 = vperm.xlu1 %2279, %v2698_v34   ;;  %v560_v34 = vmul.f32 1.442695, %v543_v5  ;;  %4200 = vst [vmem:[#allocation40_spill] sm:$0xff] %v3163_v47  ;;  %v562_v14 = vmul.f32 1.442695, %v544_v1  ;;  %4201 = vst [vmem:[#allocation41_spill] sm:$0xff] %v3166_v27  ;;  %v3168_v5 = vpop.eup %2288  ;;  %2306 = vpow2.f32 %v372_v35  ;;  %v387_v58 = vadd.f32 %v3158_v61, %v3149_v54 }
 0x186   :  { %v546_v63 = vsub.f32 %v530_v25, %v3007_v37  ;;  %v547_v29 = vsub.f32 %v531_v2, %v3031_v51  ;;  %v564_v25 = vmul.f32 1.442695, %v545_v31  ;;  %4202 = vst [vmem:[#allocation42_spill] sm:$0xff] %v3175_v32  ;;  %2308 = vpow2.f32 %v558_v56 }
 0x187   :  { %v504_v44 = vpop.permute.xlu0 %503  ;;  %2310 = vpow2.f32 %v560_v34  ;;  %v1313_v56 = vmul.f32 %v3011_v9, %v2672_v7  ;;  %v375_v48 = vadd.f32 %v3168_v5, %v374_v4  ;;  %v3200_v32 = vadd.f32 %v1312_v6, %v2675_v10 }
 0x188   :  { %v532_v39 = vmul.f32 %v504_v44, %v2950_v20  ;;  %v533_v46 = vmul.f32 %v504_v44, %v2947_v62  ;;  %1518 = vperm.xlu0 %2278, %v2704_v38   ;;  %v3172_v44 = vpop.eup %2290  ;;  %v568_v35 = vmul.f32 1.442695, %v547_v29  ;;  %2312 = vpow2.f32 %v562_v14 }
 0x189   :  { %1523 = vperm.xlu1 %2279, %v2708_v43   ;;  %v566_v43 = vmul.f32 1.442695, %v546_v63  ;;  %v3179_v42 = vpop.eup %2292  ;;  %2314 = vpow2.f32 %v564_v25  ;;  %v388_v14 = vadd.f32 %v3172_v44, %v387_v58  ;;  %v3215_v58 = vadd.f32 %v1313_v56, %v2675_v10 }
 0x18a   :  { %v548_v38 = vsub.f32 %v532_v39, %v3007_v37  ;;  %v549_v2 = vsub.f32 %v533_v46, %v3031_v51  ;;  %v4203_v46 = vld [vmem:[#allocation12_spill] sm:$0xff]  ;;  %v3184_v41 = vpop.eup %2294 }
 0x18b   :  { %v509_v1 = vpop.permute.xlu0 %508  ;;  %v3191_v34 = vpop.eup %2296  ;;  %4205 = vst [vmem:[#allocation12_spill] sm:$0xff] %v3200_v32  ;;  %2316 = vpow2.f32 %v566_v43  ;;  %v389_v6 = vadd.f32 %v3184_v41, %v388_v14 }
 0x18c   :  { %v534_v31 = vmul.f32 %v509_v1, %v2950_v20  ;;  %v535_v39 = vmul.f32 %v509_v1, %v2947_v62  ;;  %1528 = vperm.xlu0 %2278, %v4203_v46   ;;  %v570_v63 = vmul.f32 1.442695, %v548_v38  ;;  %v572_v29 = vmul.f32 1.442695, %v549_v2  ;;  %v3195_v11 = vpop.eup %2298 }
 0x18d   :  { %1533 = vperm.xlu1 %2279, %v4204_v49   ;;  %v3202_v49 = vpop.trf.xlu1  ;;  %v3204_v9 = vpop.eup %2300  ;;  %2318 = vpow2.f32 %v568_v35 }
 0x18e   :  { %v550_v1 = vsub.f32 %v534_v31, %v3007_v37  ;;  %v551_v46 = vsub.f32 %v535_v39, %v3031_v51  ;;  %4206 = vst [vmem:[#allocation13_spill] sm:$0xff] %v3202_v49  ;;  %v3209_v4 = vpop.eup %2302  ;;  %v376_v39 = vadd.f32 %v3179_v42, %v375_v48  ;;  %2320 = vpow2.f32 %v570_v63 }
 0x18f   :  { %v514_v38 = vpop.permute.xlu0 %513  ;;  %2322 = vpow2.f32 %v572_v29  ;;  %v1314_v63 = vmul.f32 %v3070_v53, %v2672_v7 }
 0x190   :  { %v574_v25 = vmul.f32 1.442695, %v550_v1  ;;  %v536_v2 = vmul.f32 %v514_v38, %v2950_v20  ;;  %v537_v31 = vmul.f32 %v514_v38, %v2947_v62  ;;  %1538 = vperm.xlu0 %2278, %v2730_v55   ;;  %v576_v43 = vmul.f32 1.442695, %v551_v46  ;;  %v3219_v38 = vpop.eup %2304  ;;  %v4207_v55 = vld [vmem:[#allocation23_spill] sm:$0xff] }
 0x191   :  { %1587 = vperm.xlu1 %2279, %v2994_v19   ;;  %v442_v32 = vmul.f32 %v3137_v21, %v4207_v55  ;;  %v443_v48 = vmul.f32 %v3149_v54, %v4207_v55  ;;  %v3227_v56 = vpop.eup %2306  ;;  %v3235_v21 = vadd.f32 %v3191_v34, %v376_v39  ;;  %v4208_v54 = vld [vmem:[#allocation24_spill] sm:$0xff] }
 0x192   :  { %v552_v35 = vsub.f32 %v536_v2, %v3007_v37  ;;  %v553_v1 = vsub.f32 %v537_v31, %v3031_v51  ;;  %2324 = vpow2.f32 %v574_v25  ;;  %v3232_v31 = vpop.eup %2308  ;;  %v444_v55 = vmul.f32 %v3143_v28, %v4208_v54  ;;  %v4211_v28 = vld [vmem:[#allocation26_spill] sm:$0xff] }
 0x193   :  { %v519_v19 = vpop.permute.xlu0 %518  ;;  %v445_v25 = vmul.f32 %v3158_v61, %v4208_v54  ;;  %2326 = vpow2.f32 %v576_v43  ;;  %v446_v47 = vmul.f32 %v3168_v5, %v4211_v28  ;;  %v3254_v61 = vadd.f32 %v1314_v63, %v2675_v10 }
 0x194   :  { %v578_v29 = vmul.f32 1.442695, %v552_v35  ;;  %v580_v46 = vmul.f32 1.442695, %v553_v1  ;;  %v538_v14 = vmul.f32 %v519_v19, %v2950_v20  ;;  %v539_v2 = vmul.f32 %v519_v19, %v2947_v62  ;;  %1592 = vperm.xlu0 %2278, %v3004_v0   ;;  %v3242_v35 = vpop.trf.xlu1  ;;  %v3244_v1 = vpop.eup %2310 }
 0x195   :  { %1597 = vperm.xlu1 %2279, %v3016_v17   ;;  %4209 = vst [vmem:[#allocation23_spill] sm:$0xff] %v3242_v35  ;;  %v3247_v0 = vadd.f32 %v3195_v11, %v389_v6  ;;  %v2313_v53 = vpop.eup %2312  ;;  %v1315_v17 = vmul.f32 %v3109_v45, %v2672_v7  ;;  %v458_v5 = vadd.f32 %v444_v55, %v442_v32 }
 0x196   :  { %2328 = vpow2.f32 %v578_v29  ;;  %v554_v39 = vsub.f32 %v538_v14, %v3007_v37  ;;  %v555_v19 = vsub.f32 %v539_v2, %v3031_v51  ;;  %v2315_v54 = vpop.eup %2314  ;;  %v471_v18 = vadd.f32 %v445_v25, %v443_v48 }
 0x197   :  { %4210 = vst [vmem:[#allocation24_spill] sm:$0xff] %v3247_v0  ;;  %2330 = vpow2.f32 %v580_v46  ;;  %v524_v43 = vpop.permute.xlu0 %523  ;;  %v3261_v2 = vpop.eup %2316  ;;  %v447_v63 = vmul.f32 %v3172_v44, %v4211_v28  ;;  %v4212_v0 = vld [vmem:[#allocation28_spill] sm:$0xff]  ;;  %v459_v48 = vadd.f32 %v458_v5, %v446_v47  ;;  %v450_v28 = vmul.f32 %v3191_v34, %v2955_v13 }
 0x198   :  { %v582_v6 = vmul.f32 1.442695, %v554_v39  ;;  %v584_v33 = vmul.f32 1.442695, %v555_v19  ;;  %v540_v29 = vmul.f32 %v524_v43, %v2950_v20  ;;  %v541_v14 = vmul.f32 %v524_v43, %v2947_v62  ;;  %1602 = vperm.xlu0 %2278, %v3019_v40   ;;  %v3268_v39 = vpop.eup %2318  ;;  %v3280_v55 = vpop.trf.xlu1 }
 0x199   :  { %v448_v46 = vmul.f32 %v3179_v42, %v4212_v0  ;;  %1607 = vperm.xlu1 %2279, %v3022_v50   ;;  %v1316_v19 = vmul.f32 %v3131_v15, %v2672_v7  ;;  %v3274_v32 = vpop.eup %2320  ;;  %v449_v44 = vmul.f32 %v3184_v41, %v4212_v0  ;;  %v1317_v42 = vmul.f32 %v3166_v27, %v2672_v7 }
 0x19a   :  { %2332 = vpow2.f32 %v582_v6  ;;  %v556_v40 = vsub.f32 %v540_v29, %v3007_v37  ;;  %v557_v43 = vsub.f32 %v541_v14, %v3031_v51  ;;  %4213 = vst [vmem:[#allocation26_spill] sm:$0xff] %v3280_v55  ;;  %v3282_v25 = vpop.eup %2322  ;;  %v590_v6 = vadd.f32 %v2313_v53, %v3232_v31 }
 0x19b   :  { %2334 = vpow2.f32 %v584_v33  ;;  %v621_v50 = vpop.permute.xlu0 %620  ;;  %v472_v41 = vadd.f32 %v471_v18, %v447_v63  ;;  %v460_v0 = vadd.f32 %v459_v48, %v448_v46  ;;  %v451_v33 = vmul.f32 %v3195_v11, %v2955_v13 }
 0x19c   :  { %v586_v29 = vmul.f32 1.442695, %v556_v40  ;;  %v588_v14 = vmul.f32 1.442695, %v557_v43  ;;  %1612 = vperm.xlu0 %2278, %v3025_v59   ;;  %v3288_v47 = vpop.eup %2324  ;;  %v603_v5 = vadd.f32 %v2315_v54, %v3244_v1  ;;  %v591_v27 = vadd.f32 %v3261_v2, %v590_v6 }
 0x19d   :  { %1617 = vperm.xlu1 %2279, %v3028_v16   ;;  %v1318_v34 = vmul.f32 %v3202_v49, %v2672_v7  ;;  %v1319_v59 = vmul.f32 %v3242_v35, %v2672_v7  ;;  %v3299_v40 = vpop.eup %2326  ;;  %v473_v18 = vadd.f32 %v472_v41, %v449_v44  ;;  %v3303_v11 = vadd.f32 %v1315_v17, %v2675_v10 }
 0x19e   :  { %2336 = vpow2.f32 %v586_v29  ;;  %v604_v63 = vadd.f32 %v3268_v39, %v603_v5  ;;  %v3307_v46 = vadd.f32 %v460_v0, %v450_v28  ;;  %v592_v43 = vadd.f32 %v3274_v32, %v591_v27 }
 0x19f   :  { %2338 = vpow2.f32 %v588_v14  ;;  %v626_v13 = vpop.permute.xlu0 %625  ;;  %v3311_v48 = vadd.f32 %v1316_v19, %v2675_v10  ;;  %v3314_v6 = vadd.f32 %v1317_v42, %v2675_v10  ;;  %v3319_v17 = vadd.f32 %v473_v18, %v451_v33 }
 0x1a0   :  { %v3305_v16 = vpop.eup %2328  ;;  %1622 = vperm.xlu0 %2278, %v3039_v12   ;;  %v605_v29 = vadd.f32 %v3282_v25, %v604_v63  ;;  %v660_v14 = vmul.f32 %v2313_v53, %v626_v13  ;;  %v661_v41 = vmul.f32 %v2315_v54, %v626_v13  ;;  %v593_v27 = vadd.f32 %v3288_v47, %v592_v43 }
 0x1a1   :  { %v3317_v44 = vpop.eup %2330  ;;  %1719 = vperm.xlu1 %2279, %v2737_v60   ;;  %v1199_v28 = vpop.xlane.xlu1 %1198  ;;  %v3325_v19 = vadd.f32 %v1318_v34, %v2675_v10  ;;  %v3328_v42 = vadd.f32 %v1319_v59, %v2675_v10  ;;  %v3333_v0 = vmul.f32 %v3204_v9, %v3036_v26  ;;  %v658_v54 = vmul.f32 %v3232_v31, %v621_v50 }
 0x1a2   :  { %v1205_v12 = vmul.f32 %v1199_v28, %v2672_v7  ;;  %v606_v53 = vadd.f32 %v3299_v40, %v605_v29  ;;  %v659_v60 = vmul.f32 %v3244_v1, %v621_v50  ;;  %v3340_v34 = vmul.f32 %v3209_v4, %v3036_v26 }
 0x1a3   :  { %v631_v33 = vpop.permute.xlu0 %630  ;;  %v594_v59 = vadd.f32 %v3305_v16, %v593_v27  ;;  %v1320_v31 = vmul.f32 %v3280_v55, %v2672_v7  ;;  %v674_v1 = vadd.f32 %v660_v14, %v658_v54 }
 0x1a4   :  { %v2333_v5 = vpop.eup %2332  ;;  %v1206_v18 = vadd.f32 %v1205_v12, %v2675_v10  ;;  %v662_v63 = vmul.f32 %v3261_v2, %v631_v33  ;;  %1724 = vperm.xlu0 %2278, %v2749_v3   ;;  %v607_v43 = vadd.f32 %v3317_v44, %v606_v53  ;;  %v687_v50 = vadd.f32 %v661_v41, %v659_v60  ;;  %v4214_v60 = vld [vmem:[#allocation14_spill] sm:$0xff] }
 0x1a5   :  { %v2335_v13 = vpop.eup %2334  ;;  %1729 = vperm.xlu1 %2279, %v2756_v8   ;;  %v282_v26 = vpop.permute.xlu1 %281  ;;  %v595_v29 = vadd.f32 %v2333_v5, %v594_v59  ;;  %v663_v2 = vmul.f32 %v3268_v39, %v631_v33 }
 0x1a6   :  { %v1209_v28 = vmax.f32 %v1206_v18, %v3082_v23  ;;  %v1210_v27 = vmin.f32 %v1206_v18, %v3082_v23  ;;  %v608_v12 = vadd.f32 %v2335_v13, %v607_v43  ;;  %v675_v3 = vadd.f32 %v674_v1, %v662_v63  ;;  %v4215_v63 = vld [vmem:[#allocation15_spill] sm:$0xff] }
 0x1a7   :  { %v312_v35 = vmul.f32 %v2950_v20, %v282_v26  ;;  %v313_v53 = vmul.f32 %v2947_v62, %v282_v26  ;;  %v636_v49 = vpop.permute.xlu0 %635  ;;  %v3365_v26 = vadd.f32 %v1320_v31, %v2675_v10 }
 0x1a8   :  { %v2337_v7 = vpop.eup %2336  ;;  %v1211_v14 = vmul.f32 %v1209_v28, %v3045_v36  ;;  %v1212_v8 = vmul.f32 %v1209_v28, %v3053_v22  ;;  %v1213_v41 = vmul.f32 %v1210_v27, %v3045_v36  ;;  %v1214_v54 = vmul.f32 %v1210_v27, %v3053_v22  ;;  %1734 = vperm.xlu0 %2278, %v4214_v60  }
 0x1a9   :  { %v2339_v23 = vpop.eup %2338  ;;  %v596_v39 = vadd.f32 %v2337_v7, %v595_v29  ;;  %v336_v33 = vsub.f32 %v312_v35, %v3007_v37  ;;  %v337_v59 = vsub.f32 %v313_v53, %v3031_v51  ;;  %v664_v18 = vmul.f32 %v3274_v32, %v636_v49  ;;  %1739 = vperm.xlu1 %2279, %v4215_v63   ;;  %v641_v43 = vpop.permute.xlu1 %640  ;;  %v4216_v32 = vld [vmem:[#allocation16_spill] sm:$0xff] }
 0x1aa   :  { %v609_v1 = vadd.f32 %v2339_v23, %v608_v12  ;;  %v688_v36 = vadd.f32 %v687_v50, %v663_v2  ;;  %v665_v22 = vmul.f32 %v3282_v25, %v636_v49  ;;  %v1215_v15 = vmax.f32 %v1211_v14, %v1213_v41 }
 0x1ab   :  { %v597_v28 = vrot.slane %v596_v39, 4  ;;  %v362_v27 = vmul.f32 1.442695, %v336_v33  ;;  %v364_v60 = vmul.f32 1.442695, %v337_v59  ;;  %v676_v29 = vadd.f32 %v675_v3, %v664_v18  ;;  %v646_v55 = vpop.permute.xlu0 %645 }
 0x1ac   :  { %v610_v35 = vrot.slane %v609_v1, 4  ;;  %v1216_v53 = vmax.f32 %v1212_v8, %v1214_v54  ;;  %v689_v45 = vadd.f32 %v688_v36, %v665_v22  ;;  %1744 = vperm.xlu0 %2278, %v4216_v32   ;;  %v666_v12 = vmul.f32 %v3288_v47, %v641_v43  ;;  %v4217_v54 = vld [vmem:[#allocation33_spill] sm:$0xff] }
 0x1ad   :  { %v598_v63 = vadd.f32 %v597_v28, %v596_v39  ;;  %2340 = vpow2.f32 %v362_v27  ;;  %v667_v10 = vmul.f32 %v3299_v40, %v641_v43  ;;  %1749 = vperm.xlu1 %2279, %v2791_v30   ;;  %v651_v49 = vpop.permute.xlu1 %650  ;;  %v668_v31 = vmul.f32 %v3305_v16, %v646_v55 }
 0x1ae   :  { %v611_v25 = vadd.f32 %v610_v35, %v609_v1  ;;  %2342 = vpow2.f32 %v364_v60  ;;  %v669_v50 = vmul.f32 %v3317_v44, %v646_v55  ;;  %v677_v3 = vadd.f32 %v676_v29, %v666_v12 }
 0x1af   :  { %v599_v2 = vrot.slane %v598_v63, 2  ;;  %v690_v14 = vadd.f32 %v689_v45, %v667_v10  ;;  %v670_v8 = vmul.f32 %v2333_v5, %v651_v49  ;;  %v656_v41 = vpop.permute.xlu0 %655  ;;  %v3376_v39 = vmul.f32 %v3219_v38, %v4217_v54 }
 0x1b0   :  { %v612_v47 = vrot.slane %v611_v25, 2  ;;  %v671_v40 = vmul.f32 %v2335_v13, %v651_v49  ;;  %v672_v33 = vmul.f32 %v2337_v7, %v656_v41  ;;  %1803 = vperm.xlu0 %2278, %v3092_v57   ;;  %v678_v59 = vadd.f32 %v677_v3, %v668_v31  ;;  %v4218_v7 = vld [vmem:[#allocation11_spill] sm:$0xff] }
 0x1b1   :  { %v3379_v30 = vadd.f32 %v599_v2, %v598_v63  ;;  %v691_v16 = vadd.f32 %v690_v14, %v669_v50  ;;  %v673_v18 = vmul.f32 %v2339_v23, %v656_v41  ;;  %1808 = vperm.xlu1 %2279, %v3095_v24   ;;  %v705_v55 = vpop.permute.xlu1 %704  ;;  %v3384_v45 = vmul.f32 %v3227_v56, %v4217_v54  ;;  %v4220_v54 = vld [vmem:[#allocation24_spill] sm:$0xff] }
 0x1b2   :  { %v3386_v44 = vadd.f32 %v612_v47, %v611_v25  ;;  %v742_v5 = vmul.f32 %v705_v55, %v2950_v20  ;;  %v743_v13 = vmul.f32 %v705_v55, %v2947_v62  ;;  %v3391_v57 = vrot.slane %v1215_v15, %v4218_v7 }
 0x1b3   :  { %v3394_v43 = vrot.slane %v1216_v53, %v4218_v7  ;;  %v679_v23 = vadd.f32 %v678_v59, %v670_v8  ;;  %v692_v1 = vadd.f32 %v691_v16, %v671_v40  ;;  %v710_v24 = vpop.permute.xlu0 %709  ;;  %v4219_v8 = vld [vmem:[#allocation30_spill] sm:$0xff]  ;;  %v4221_v16 = vld [vmem:[#allocation37_spill] sm:$0xff] }
 0x1b4   :  { %v758_v22 = vsub.f32 %v742_v5, %v3007_v37  ;;  %v759_v28 = vsub.f32 %v743_v13, %v3031_v51  ;;  %v744_v27 = vmul.f32 %v710_v24, %v2950_v20  ;;  %1813 = vperm.xlu0 %2278, %v3102_v52   ;;  %v745_v35 = vmul.f32 %v710_v24, %v2947_v62 }
 0x1b5   :  { %v680_v15 = vadd.f32 %v679_v23, %v672_v33  ;;  %v693_v29 = vadd.f32 %v692_v1, %v673_v18  ;;  %2019 = vperm.xlu1 %2279, %v3215_v58   ;;  %v715_v53 = vpop.permute.xlu1 %714 }
 0x1b6   :  { %v774_v32 = vmul.f32 1.442695, %v758_v22  ;;  %v776_v63 = vmul.f32 1.442695, %v759_v28  ;;  %v760_v12 = vsub.f32 %v744_v27, %v3007_v37  ;;  %v746_v10 = vmul.f32 %v715_v53, %v2950_v20 }
 0x1b7   :  { %v2341_v49 = vpop.eup %2340  ;;  %v681_v25 = vrot.slane %v680_v15, 4  ;;  %v694_v31 = vrot.slane %v693_v29, 4  ;;  %v761_v52 = vsub.f32 %v745_v35, %v3031_v51  ;;  %v747_v50 = vmul.f32 %v715_v53, %v2947_v62  ;;  %v720_v2 = vpop.permute.xlu0 %719 }
 0x1b8   :  { %v2343_v3 = vpop.eup %2342  ;;  %v378_v14 = vadd.f32 %v2341_v49, %v3235_v21  ;;  %v452_v58 = vmul.f32 %v2341_v49, %v4219_v8  ;;  %2344 = vpow2.f32 %v774_v32  ;;  %v778_v41 = vmul.f32 1.442695, %v760_v12  ;;  %2024 = vperm.xlu0 %2278, %v3254_v61  }
 0x1b9   :  { %v391_v47 = vadd.f32 %v2343_v3, %v4220_v54  ;;  %v453_v40 = vmul.f32 %v2343_v3, %v4219_v8  ;;  %v682_v33 = vadd.f32 %v681_v25, %v680_v15  ;;  %v695_v59 = vadd.f32 %v694_v31, %v693_v29  ;;  %1818 = vperm.xlu1 %2279, %v4221_v16   ;;  %v725_v18 = vpop.permute.xlu1 %724  ;;  %v4222_v15 = vld [vmem:[#allocation39_spill] sm:$0xff] }
 0x1ba   :  { %v379_v55 = vadd.f32 %v3204_v9, %v378_v14  ;;  %v462_v5 = vadd.f32 %v3307_v46, %v452_v58  ;;  %2346 = vpow2.f32 %v776_v63  ;;  %v780_v21 = vmul.f32 1.442695, %v761_v52  ;;  %v4223_v52 = vld [vmem:[#allocation40_spill] sm:$0xff] }
 0x1bb   :  { %v392_v13 = vadd.f32 %v3209_v4, %v391_v47  ;;  %v475_v7 = vadd.f32 %v3319_v17, %v453_v40  ;;  %v683_v61 = vrot.slane %v682_v33, 2  ;;  %v696_v23 = vrot.slane %v695_v59, 2  ;;  %v730_v1 = vpop.permute.xlu0 %729 }
 0x1bc   :  { %v380_v24 = vadd.f32 %v3219_v38, %v379_v55  ;;  %v463_v22 = vadd.f32 %v462_v5, %v3333_v0  ;;  %2348 = vpow2.f32 %v778_v41  ;;  %v762_v28 = vsub.f32 %v746_v10, %v3007_v37  ;;  %2029 = vperm.xlu0 %2278, %v3303_v11  }
 0x1bd   :  { %v393_v9 = vadd.f32 %v3227_v56, %v392_v13  ;;  %v476_v46 = vadd.f32 %v475_v7, %v3340_v34  ;;  %v684_v27 = vadd.f32 %v683_v61, %v682_v33  ;;  %v697_v4 = vadd.f32 %v696_v23, %v695_v59  ;;  %1823 = vperm.xlu1 %2279, %v4222_v15   ;;  %v3425_v17 = vpop.permute.xlu1 %734 }
 0x1be   :  { %v381_v29 = vrot.slane %v380_v24, 4  ;;  %v464_v38 = vadd.f32 %v463_v22, %v3376_v39  ;;  %2350 = vpow2.f32 %v780_v21  ;;  %v763_v0 = vsub.f32 %v747_v50, %v3031_v51 }
 0x1bf   :  { %v394_v35 = vrot.slane %v393_v9, 4  ;;  %v477_v53 = vadd.f32 %v476_v46, %v3384_v45  ;;  %v685_v11 = vrot.slane %v684_v27, 1  ;;  %v698_v32 = vrot.slane %v697_v4, 1  ;;  %v3430_v56 = vpop.permute.xlu0 %739 }
 0x1c0   :  { %v3432_v34 = vadd.f32 %v381_v29, %v380_v24  ;;  %v465_v63 = vrot.slane %v464_v38, 4  ;;  %v782_v12 = vmul.f32 1.442695, %v762_v28  ;;  %v784_v10 = vmul.f32 1.442695, %v763_v0  ;;  %2034 = vperm.xlu0 %2278, %v3311_v48  }
 0x1c1   :  { %v3435_v49 = vadd.f32 %v394_v35, %v393_v9  ;;  %v478_v39 = vrot.slane %v477_v53, 4  ;;  %v686_v25 = vadd.f32 %v685_v11, %v684_v27  ;;  %v3437_v31 = vadd.f32 %v698_v32, %v697_v4  ;;  %1828 = vperm.xlu1 %2279, %v4223_v52   ;;  %v3440_v45 = vpop.permute.xlu1 %836 }
 0x1c2   :  { %v3442_v50 = vpop.eup %2344  ;;  %v466_v14 = vadd.f32 %v465_v63, %v464_v38  ;;  %2352 = vpow2.f32 %v782_v12  ;;  %v748_v8 = vmul.f32 %v720_v2, %v2950_v20  ;;  %v749_v41 = vmul.f32 %v720_v2, %v2947_v62  ;;  %v4224_v2 = vld [vmem:[#allocation42_spill] sm:$0xff] }
 0x1c3   :  { %v479_v58 = vadd.f32 %v478_v39, %v477_v53  ;;  %2354 = vpow2.f32 %v784_v10  ;;  %v3448_v54 = vpop.permute.xlu0 %841  ;;  %v750_v59 = vmul.f32 %v725_v18, %v2950_v20  ;;  %v751_v16 = vmul.f32 %v725_v18, %v2947_v62  ;;  %v4225_v53 = vld [vmem:[#allocation12_spill] sm:$0xff] }
 0x1c4   :  { %v2347_v47 = vpop.eup %2346  ;;  %v467_v40 = vrot.slane %v466_v14, 2  ;;  %v764_v33 = vsub.f32 %v748_v8, %v3007_v37  ;;  %2039 = vperm.xlu0 %2278, %v3314_v6   ;;  %v765_v5 = vsub.f32 %v749_v41, %v3031_v51  ;;  %v752_v21 = vmul.f32 %v730_v1, %v2950_v20 }
 0x1c5   :  { %v480_v55 = vrot.slane %v479_v58, 2  ;;  %v753_v13 = vmul.f32 %v730_v1, %v2947_v62  ;;  %1833 = vperm.xlu1 %2279, %v4224_v2   ;;  %v847_v7 = vpop.permute.xlu1 %846  ;;  %v766_v22 = vsub.f32 %v750_v59, %v3007_v37  ;;  %v767_v28 = vsub.f32 %v751_v16, %v3031_v51 }
 0x1c6   :  { %v2349_v61 = vpop.eup %2348  ;;  %v468_v23 = vadd.f32 %v467_v40, %v466_v14  ;;  %v786_v24 = vmul.f32 1.442695, %v764_v33  ;;  %v788_v9 = vmul.f32 1.442695, %v765_v5  ;;  %v768_v46 = vsub.f32 %v752_v21, %v3007_v37 }
 0x1c7   :  { %v481_v18 = vadd.f32 %v480_v55, %v479_v58  ;;  %v806_v6 = vadd.f32 %v2349_v61, %v3442_v50  ;;  %v3462_v27 = vpop.permute.xlu0 %851  ;;  %v790_v15 = vmul.f32 1.442695, %v766_v22  ;;  %v792_v29 = vmul.f32 1.442695, %v767_v28  ;;  %v4226_v28 = vld [vmem:[#allocation18_spill] sm:$0xff] }
 0x1c8   :  { %v2351_v4 = vpop.eup %2350  ;;  %v469_v1 = vrot.slane %v468_v23, 1  ;;  %2356 = vpow2.f32 %v786_v24  ;;  %2044 = vperm.xlu0 %2278, %v3325_v19   ;;  %v769_v35 = vsub.f32 %v753_v13, %v3031_v51  ;;  %v794_v63 = vmul.f32 1.442695, %v768_v46 }
 0x1c9   :  { %v482_v38 = vrot.slane %v481_v18, 1  ;;  %v819_v0 = vadd.f32 %v2351_v4, %v2347_v47  ;;  %2358 = vpow2.f32 %v788_v9  ;;  %1838 = vperm.xlu1 %2279, %v4225_v53   ;;  %v3467_v11 = vpop.permute.xlu1 %856  ;;  %v754_v12 = vmul.f32 %v3425_v17, %v2950_v20  ;;  %v4227_v9 = vld [vmem:[#allocation19_spill] sm:$0xff] }
 0x1ca   :  { %v470_v32 = vadd.f32 %v469_v1, %v468_v23  ;;  %2360 = vpow2.f32 %v790_v15  ;;  %v796_v39 = vmul.f32 1.442695, %v769_v35  ;;  %v755_v19 = vmul.f32 %v3425_v17, %v2947_v62 }
 0x1cb   :  { %v483_v10 = vadd.f32 %v482_v38, %v481_v18  ;;  %2362 = vpow2.f32 %v792_v29  ;;  %v3473_v52 = vpop.permute.xlu0 %861  ;;  %v770_v58 = vsub.f32 %v754_v12, %v3007_v37  ;;  %v756_v41 = vmul.f32 %v3430_v56, %v2950_v20 }
 0x1cc   :  { %v2353_v14 = vpop.eup %2352  ;;  %v3475_v8 = vadd.f32 %v686_v25, %v470_v32  ;;  %2364 = vpow2.f32 %v794_v63  ;;  %2049 = vperm.xlu0 %2278, %v3328_v42   ;;  %v771_v17 = vsub.f32 %v755_v19, %v3031_v51  ;;  %v757_v5 = vmul.f32 %v3430_v56, %v2947_v62  ;;  %v4228_v32 = vld [vmem:[#allocation20_spill] sm:$0xff] }
 0x1cd   :  { %v2355_v40 = vpop.eup %2354  ;;  %v3482_v33 = vadd.f32 %v3437_v31, %v483_v10  ;;  %v807_v59 = vadd.f32 %v2353_v14, %v806_v6  ;;  %2366 = vpow2.f32 %v796_v39  ;;  %2054 = vperm.xlu1 %2279, %v3365_v26   ;;  %v3486_v25 = vpop.permute.xlu1 %866  ;;  %v798_v55 = vmul.f32 1.442695, %v770_v58 }
 0x1ce   :  { %v820_v16 = vadd.f32 %v2355_v40, %v819_v0  ;;  %v772_v21 = vsub.f32 %v756_v41, %v3007_v37  ;;  %v800_v42 = vmul.f32 1.442695, %v771_v17  ;;  %v874_v31 = vmul.f32 %v3442_v50, %v3440_v45 }
 0x1cf   :  { %v875_v13 = vmul.f32 %v2347_v47, %v3440_v45  ;;  %v876_v2 = vmul.f32 %v2349_v61, %v3448_v54  ;;  %v3495_v23 = vpop.permute.xlu0 %871  ;;  %2368 = vpow2.f32 %v798_v55  ;;  %v773_v26 = vsub.f32 %v757_v5, %v3031_v51 }
 0x1d0   :  { %v802_v24 = vmul.f32 1.442695, %v772_v21  ;;  %v877_v22 = vmul.f32 %v2351_v4, %v3448_v54  ;;  %1935 = vperm.xlu0 %2278, %v4226_v28   ;;  %2370 = vpow2.f32 %v800_v42  ;;  %v878_v18 = vmul.f32 %v2353_v14, %v847_v7  ;;  %v4229_v14 = vld [vmem:[#allocation31_spill] sm:$0xff] }
 0x1d1   :  { %v890_v56 = vadd.f32 %v876_v2, %v874_v31  ;;  %v879_v6 = vmul.f32 %v2355_v40, %v847_v7  ;;  %1940 = vperm.xlu1 %2279, %v4227_v9   ;;  %v921_v50 = vpop.permute.xlu1 %920  ;;  %v804_v47 = vmul.f32 1.442695, %v773_v26 }
 0x1d2   :  { %v2357_v45 = vpop.eup %2356  ;;  %2372 = vpow2.f32 %v802_v24  ;;  %v903_v61 = vadd.f32 %v877_v22, %v875_v13  ;;  %v958_v46 = vmul.f32 %v921_v50, %v2950_v20  ;;  %v959_v4 = vmul.f32 %v921_v50, %v2947_v62  ;;  %v4230_v22 = vld [vmem:[#allocation34_spill] sm:$0xff] }
 0x1d3   :  { %v2359_v1 = vpop.eup %2358  ;;  %v808_v15 = vadd.f32 %v2357_v45, %v807_v59  ;;  %v891_v29 = vadd.f32 %v890_v56, %v878_v18  ;;  %v880_v54 = vmul.f32 %v2357_v45, %v3462_v27  ;;  %v926_v38 = vpop.permute.xlu0 %925  ;;  %2374 = vpow2.f32 %v804_v47  ;;  %v4231_v18 = vld [vmem:[#allocation21_spill] sm:$0xff] }
 0x1d4   :  { %v2361_v0 = vpop.eup %2360  ;;  %v821_v35 = vadd.f32 %v2359_v1, %v820_v16  ;;  %v904_v7 = vadd.f32 %v903_v61, %v879_v6  ;;  %v881_v53 = vmul.f32 %v2359_v1, %v3462_v27  ;;  %1945 = vperm.xlu0 %2278, %v4228_v32   ;;  %v974_v19 = vsub.f32 %v958_v46, %v3007_v37 }
 0x1d5   :  { %v2363_v63 = vpop.eup %2362  ;;  %v809_v12 = vadd.f32 %v2361_v0, %v808_v15  ;;  %v892_v10 = vadd.f32 %v891_v29, %v880_v54  ;;  %v882_v39 = vmul.f32 %v2361_v0, %v3467_v11  ;;  %2151 = vperm.xlu1 %2279, %v4229_v14   ;;  %v931_v58 = vpop.permute.xlu1 %930  ;;  %v975_v16 = vsub.f32 %v959_v4, %v3031_v51 }
 0x1d6   :  { %v2365_v41 = vpop.eup %2364  ;;  %v822_v40 = vadd.f32 %v2363_v63, %v821_v35  ;;  %v905_v59 = vadd.f32 %v904_v7, %v881_v53  ;;  %v883_v17 = vmul.f32 %v2363_v63, %v3467_v11  ;;  %v990_v42 = vmul.f32 1.442695, %v974_v19  ;;  %v4232_v7 = vld [vmem:[#allocation36_spill] sm:$0xff] }
 0x1d7   :  { %v2367_v27 = vpop.eup %2366  ;;  %v810_v55 = vadd.f32 %v2365_v41, %v809_v12  ;;  %v893_v5 = vadd.f32 %v892_v10, %v882_v39  ;;  %v884_v21 = vmul.f32 %v2365_v41, %v3473_v52  ;;  %v936_v31 = vpop.permute.xlu0 %935  ;;  %v992_v24 = vmul.f32 1.442695, %v975_v16  ;;  %v4233_v10 = vld [vmem:[#allocation22_spill] sm:$0xff] }
 0x1d8   :  { %v823_v13 = vadd.f32 %v2367_v27, %v822_v40  ;;  %v906_v2 = vadd.f32 %v905_v59, %v883_v17  ;;  %v885_v26 = vmul.f32 %v2367_v27, %v3473_v52  ;;  %2156 = vperm.xlu0 %2278, %v4230_v22   ;;  %2376 = vpow2.f32 %v990_v42  ;;  %v4234_v42 = vld [vmem:[#allocation38_spill] sm:$0xff]  ;;  %v4235_v22 = vld [vmem:[#allocation25_spill] sm:$0xff] }
 0x1d9   :  { %v894_v28 = vadd.f32 %v893_v5, %v884_v21  ;;  %v960_v11 = vmul.f32 %v926_v38, %v2950_v20  ;;  %v961_v56 = vmul.f32 %v926_v38, %v2947_v62  ;;  %1950 = vperm.xlu1 %2279, %v4231_v18   ;;  %v941_v6 = vpop.permute.xlu1 %940  ;;  %v2369_v9 = vpop.eup %2368  ;;  %2378 = vpow2.f32 %v992_v24 }
 0x1da   :  { %v907_v50 = vadd.f32 %v906_v2, %v885_v26  ;;  %v962_v45 = vmul.f32 %v931_v58, %v2950_v20  ;;  %v963_v47 = vmul.f32 %v931_v58, %v2947_v62  ;;  %v2371_v52 = vpop.eup %2370  ;;  %v811_v61 = vadd.f32 %v2369_v9, %v810_v55 }
 0x1db   :  { %v886_v46 = vmul.f32 %v2369_v9, %v3486_v25  ;;  %v976_v1 = vsub.f32 %v960_v11, %v3007_v37  ;;  %v977_v15 = vsub.f32 %v961_v56, %v3031_v51  ;;  %v3522_v29 = vpop.permute.xlu0 %945  ;;  %v824_v4 = vadd.f32 %v2371_v52, %v823_v13 }
 0x1dc   :  { %v2373_v54 = vpop.eup %2372  ;;  %v887_v38 = vmul.f32 %v2371_v52, %v3486_v25  ;;  %v978_v0 = vsub.f32 %v962_v45, %v3007_v37  ;;  %v979_v35 = vsub.f32 %v963_v47, %v3031_v51  ;;  %2161 = vperm.xlu0 %2278, %v4232_v7   ;;  %v964_v55 = vmul.f32 %v936_v31, %v2950_v20 }
 0x1dd   :  { %v812_v53 = vadd.f32 %v2373_v54, %v811_v61  ;;  %v895_v32 = vadd.f32 %v894_v28, %v886_v46  ;;  %v888_v63 = vmul.f32 %v2373_v54, %v3495_v23  ;;  %v994_v12 = vmul.f32 1.442695, %v976_v1  ;;  %1955 = vperm.xlu1 %2279, %v4233_v10   ;;  %v3530_v39 = vpop.permute.xlu1 %950  ;;  %v2375_v19 = vpop.eup %2374 }
 0x1de   :  { %v908_v14 = vadd.f32 %v907_v50, %v887_v38  ;;  %v996_v58 = vmul.f32 1.442695, %v977_v15  ;;  %v998_v41 = vmul.f32 1.442695, %v978_v0  ;;  %v1000_v25 = vmul.f32 1.442695, %v979_v35 }
 0x1df   :  { %v813_v40 = vrot.slane %v812_v53, 4  ;;  %v825_v59 = vadd.f32 %v2375_v19, %v824_v4  ;;  %v889_v17 = vmul.f32 %v2375_v19, %v3495_v23  ;;  %v896_v16 = vadd.f32 %v895_v32, %v888_v63  ;;  %v3533_v27 = vpop.permute.xlu0 %955  ;;  %v4236_v15 = vld [vmem:[#allocation41_spill] sm:$0xff] }
 0x1e0   :  { %2380 = vpow2.f32 %v994_v12  ;;  %v965_v5 = vmul.f32 %v936_v31, %v2947_v62  ;;  %v966_v21 = vmul.f32 %v941_v6, %v2950_v20  ;;  %2166 = vperm.xlu0 %2278, %v4234_v42   ;;  %v980_v23 = vsub.f32 %v964_v55, %v3007_v37  ;;  %v4237_v0 = vld [vmem:[#allocation17_spill] sm:$0xff] }
 0x1e1   :  { %v814_v13 = vadd.f32 %v813_v40, %v812_v53  ;;  %v826_v2 = vrot.slane %v825_v59, 4  ;;  %v897_v26 = vrot.slane %v896_v16, 4  ;;  %v909_v24 = vadd.f32 %v908_v14, %v889_v17  ;;  %1960 = vperm.xlu1 %2279, %v4235_v22   ;;  %v3540_v28 = vpop.permute.xlu1 %1052  ;;  %v4238_v40 = vld [vmem:[#allocation27_spill] sm:$0xff]  ;;  %v4239_v55 = vld [vmem:[#allocation13_spill] sm:$0xff] }
 0x1e2   :  { %2382 = vpow2.f32 %v996_v58  ;;  %v981_v11 = vsub.f32 %v965_v5, %v3031_v51  ;;  %v967_v56 = vmul.f32 %v941_v6, %v2947_v62  ;;  %v3545_v31 = vpop.eup %2376  ;;  %v1002_v61 = vmul.f32 1.442695, %v980_v23 }
 0x1e3   :  { %v815_v18 = vrot.slane %v814_v13, 2  ;;  %v827_v9 = vadd.f32 %v826_v2, %v825_v59  ;;  %v898_v50 = vadd.f32 %v897_v26, %v896_v16  ;;  %v910_v45 = vrot.slane %v909_v24, 4  ;;  %v3547_v47 = vpop.permute.xlu0 %1057  ;;  %v3549_v52 = vpop.eup %2378 }
 0x1e4   :  { %2384 = vpow2.f32 %v998_v41  ;;  %v1004_v46 = vmul.f32 1.442695, %v981_v11  ;;  %v982_v1 = vsub.f32 %v966_v21, %v3007_v37  ;;  %2171 = vperm.xlu0 %2278, %v4236_v15   ;;  %v983_v7 = vsub.f32 %v967_v56, %v3031_v51 }
 0x1e5   :  { %v3553_v54 = vadd.f32 %v815_v18, %v814_v13  ;;  %v828_v6 = vrot.slane %v827_v9, 2  ;;  %v899_v4 = vrot.slane %v898_v50, 2  ;;  %v911_v38 = vadd.f32 %v910_v45, %v909_v24  ;;  %1754 = vperm.xlu1 %2279, %v4237_v0   ;;  %v3556_v35 = vpop.permute.xlu1 %1062 }
 0x1e6   :  { %2386 = vpow2.f32 %v1000_v25  ;;  %v1006_v53 = vmul.f32 1.442695, %v982_v1  ;;  %v968_v32 = vmul.f32 %v3522_v29, %v2950_v20  ;;  %v1008_v58 = vmul.f32 1.442695, %v983_v7  ;;  %v4241_v1 = vld [vmem:[#allocation23_spill] sm:$0xff] }
 0x1e7   :  { %v3562_v12 = vadd.f32 %v828_v6, %v827_v9  ;;  %v900_v10 = vadd.f32 %v899_v4, %v898_v50  ;;  %v912_v19 = vrot.slane %v911_v38, 2  ;;  %v3564_v14 = vpop.permute.xlu0 %1067  ;;  %2388 = vpow2.f32 %v1002_v61  ;;  %v4240_v9 = vld [vmem:[#allocation29_spill] sm:$0xff] }
 0x1e8   :  { %v969_v41 = vmul.f32 %v3522_v29, %v2947_v62  ;;  %v984_v25 = vsub.f32 %v968_v32, %v3007_v37  ;;  %1965 = vperm.xlu0 %2278, %v4238_v40   ;;  %2390 = vpow2.f32 %v1004_v46  ;;  %v970_v29 = vmul.f32 %v3530_v39, %v2950_v20 }
 0x1e9   :  { %v901_v17 = vrot.slane %v900_v10, 1  ;;  %v913_v16 = vadd.f32 %v912_v19, %v911_v38  ;;  %2176 = vperm.xlu1 %2279, %v4239_v55   ;;  %v3572_v5 = vpop.permute.xlu1 %1072  ;;  %2392 = vpow2.f32 %v1006_v53  ;;  %v971_v56 = vmul.f32 %v3530_v39, %v2947_v62 }
 0x1ea   :  { %v2381_v21 = vpop.eup %2380  ;;  %v985_v42 = vsub.f32 %v969_v41, %v3031_v51  ;;  %v1010_v13 = vmul.f32 1.442695, %v984_v25  ;;  %2394 = vpow2.f32 %v1008_v58  ;;  %v986_v18 = vsub.f32 %v970_v29, %v3007_v37 }
 0x1eb   :  { %v902_v2 = vadd.f32 %v901_v17, %v900_v10  ;;  %v914_v26 = vrot.slane %v913_v16, 1  ;;  %v1022_v24 = vadd.f32 %v2381_v21, %v3545_v31  ;;  %v3578_v22 = vpop.permute.xlu0 %1077  ;;  %v972_v46 = vmul.f32 %v3533_v27, %v2950_v20 }
 0x1ec   :  { %v2383_v23 = vpop.eup %2382  ;;  %2396 = vpow2.f32 %v1010_v13  ;;  %v1012_v11 = vmul.f32 1.442695, %v985_v42  ;;  %1970 = vperm.xlu0 %2278, %v4240_v9   ;;  %v987_v39 = vsub.f32 %v971_v56, %v3031_v51  ;;  %v1014_v4 = vmul.f32 1.442695, %v986_v18 }
 0x1ed   :  { %v915_v50 = vadd.f32 %v914_v26, %v913_v16  ;;  %v3585_v45 = vadd.f32 %v902_v2, %v3475_v8  ;;  %v1035_v61 = vadd.f32 %v2383_v23, %v3549_v52  ;;  %2181 = vperm.xlu1 %2279, %v4241_v1   ;;  %v3591_v15 = vpop.permute.xlu1 %1082  ;;  %v973_v38 = vmul.f32 %v3533_v27, %v2947_v62  ;;  %v4243_v62 = vld [vmem:[#allocation26_spill] sm:$0xff] }
 0x1ee   :  { %v2385_v6 = vpop.eup %2384  ;;  %2398 = vpow2.f32 %v1012_v11  ;;  %v988_v7 = vsub.f32 %v972_v46, %v3007_v37  ;;  %v1090_v20 = vmul.f32 %v3545_v31, %v3540_v28  ;;  %v1016_v10 = vmul.f32 1.442695, %v987_v39  ;;  %v4245_v46 = vld [vmem:[#allocation35_spill] sm:$0xff] }
 0x1ef   :  { %v3597_v8 = vadd.f32 %v915_v50, %v3482_v33  ;;  %v1023_v0 = vadd.f32 %v2385_v6, %v1022_v24  ;;  %v3602_v53 = vpop.permute.xlu0 %1087  ;;  %2400 = vpow2.f32 %v1014_v4  ;;  %v989_v19 = vsub.f32 %v973_v38, %v3031_v51  ;;  %v4244_v50 = vld [vmem:[#allocation32_spill] sm:$0xff] }
 0x1f0   :  { %v2387_v32 = vpop.eup %2386  ;;  %v1091_v58 = vmul.f32 %v3549_v52, %v3540_v28  ;;  %2186 = vperm.xlu0 %2278, %v4243_v62   ;;  %v1018_v27 = vmul.f32 1.442695, %v988_v7  ;;  %v1092_v41 = vmul.f32 %v2381_v21, %v3547_v47  ;;  %v1093_v37 = vmul.f32 %v2383_v23, %v3547_v47 }
 0x1f1   :  { %4242 = vst [vmem:[#allocation28_spill] sm:$0xff] %v3597_v8  ;;  %v1036_v33 = vadd.f32 %v2387_v32, %v1035_v61  ;;  %v1361_v25 = vpop.permute.xlu1 %1360  ;;  %v2389_v31 = vpop.eup %2388  ;;  %2402 = vpow2.f32 %v1016_v10  ;;  %v1020_v40 = vmul.f32 1.442695, %v989_v19  ;;  %v1094_v17 = vmul.f32 %v2385_v6, %v3556_v35 }
 0x1f2   :  { %v1095_v16 = vmul.f32 %v2387_v32, %v3556_v35  ;;  %v2391_v51 = vpop.eup %2390  ;;  %v1024_v55 = vadd.f32 %v2389_v31, %v1023_v0  ;;  %2404 = vpow2.f32 %v1018_v27  ;;  %v1106_v28 = vadd.f32 %v1092_v41, %v1090_v20 }
 0x1f3   :  { %v1119_v52 = vadd.f32 %v1093_v37, %v1091_v58  ;;  %v1356_v42 = vpop.permute.xlu0 %1355  ;;  %v2393_v13 = vpop.eup %2392  ;;  %v1037_v29 = vadd.f32 %v2391_v51, %v1036_v33  ;;  %2406 = vpow2.f32 %v1020_v40  ;;  %v1096_v21 = vmul.f32 %v2389_v31, %v3564_v14 }
 0x1f4   :  { %v1097_v47 = vmul.f32 %v2391_v51, %v3564_v14  ;;  %v2395_v2 = vpop.eup %2394  ;;  %v1025_v26 = vadd.f32 %v2393_v13, %v1024_v55  ;;  %v1107_v24 = vadd.f32 %v1106_v28, %v1094_v17  ;;  %v1098_v11 = vmul.f32 %v2393_v13, %v3572_v5 }
 0x1f5   :  { %v1120_v23 = vadd.f32 %v1119_v52, %v1095_v16  ;;  %v1366_v35 = vpop.permute.xlu1 %1365  ;;  %v1038_v18 = vadd.f32 %v2395_v2, %v1037_v29  ;;  %v1099_v9 = vmul.f32 %v2395_v2, %v3572_v5  ;;  %v1403_v61 = vmul.f32 %v4244_v50, %v1361_v25 }
 0x1f6   :  { %v2397_v56 = vpop.eup %2396  ;;  %v1404_v1 = vmul.f32 %v4245_v46, %v1361_v25  ;;  %v1108_v39 = vadd.f32 %v1107_v24, %v1096_v21  ;;  %v1401_v32 = vmul.f32 %v4244_v50, %v1356_v42  ;;  %v1402_v10 = vmul.f32 %v4245_v46, %v1356_v42 }
 0x1f7   :  { %v1026_v6 = vadd.f32 %v2397_v56, %v1025_v26  ;;  %v1121_v4 = vadd.f32 %v1120_v23, %v1097_v47  ;;  %v1100_v14 = vmul.f32 %v2397_v56, %v3578_v22  ;;  %v1371_v38 = vpop.permute.xlu0 %1370  ;;  %v1427_v7 = vsub.f32 %v1403_v61, %v3391_v57 }
 0x1f8   :  { %v2399_v0 = vpop.eup %2398  ;;  %v1428_v20 = vsub.f32 %v1404_v1, %v3394_v43  ;;  %v1109_v19 = vadd.f32 %v1108_v39, %v1098_v11  ;;  %v1425_v25 = vsub.f32 %v1401_v32, %v3391_v57  ;;  %v1426_v31 = vsub.f32 %v1402_v10, %v3394_v43 }
 0x1f9   :  { %v1039_v5 = vadd.f32 %v2399_v0, %v1038_v18  ;;  %v1122_v58 = vadd.f32 %v1121_v4, %v1099_v9  ;;  %v1101_v62 = vmul.f32 %v2399_v0, %v3578_v22  ;;  %v3624_v33 = vpop.permute.xlu1 %1375  ;;  %v2401_v27 = vpop.eup %2400  ;;  %v1445_v41 = vmul.f32 1.442695, %v1427_v7 }
 0x1fa   :  { %v1447_v37 = vmul.f32 1.442695, %v1428_v20  ;;  %v1027_v40 = vadd.f32 %v2401_v27, %v1026_v6  ;;  %v1110_v17 = vadd.f32 %v1109_v19, %v1100_v14  ;;  %v1102_v51 = vmul.f32 %v2401_v27, %v3591_v15 }
 0x1fb   :  { %v1123_v16 = vadd.f32 %v1122_v58, %v1101_v62  ;;  %v3629_v55 = vpop.permute.xlu0 %1380  ;;  %v2403_v28 = vpop.eup %2402  ;;  %2408 = vpow2.f32 %v1445_v41  ;;  %v1441_v52 = vmul.f32 1.442695, %v1425_v25  ;;  %v1443_v22 = vmul.f32 1.442695, %v1426_v31 }
 0x1fc   :  { %v1405_v42 = vmul.f32 %v4244_v50, %v1366_v35  ;;  %v2405_v13 = vpop.eup %2404  ;;  %v1040_v29 = vadd.f32 %v2403_v28, %v1039_v5  ;;  %v1103_v21 = vmul.f32 %v2403_v28, %v3591_v15  ;;  %v1111_v47 = vadd.f32 %v1110_v17, %v1102_v51 }
 0x1fd   :  { %2410 = vpow2.f32 %v1447_v37  ;;  %v3633_v2 = vpop.permute.xlu1 %1385  ;;  %v2407_v26 = vpop.eup %2406  ;;  %v1028_v24 = vadd.f32 %v2405_v13, %v1027_v40  ;;  %v1104_v23 = vmul.f32 %v2405_v13, %v3602_v53  ;;  %v1406_v11 = vmul.f32 %v4245_v46, %v1366_v35 }
 0x1fe   :  { %2412 = vpow2.f32 %v1441_v52  ;;  %v1041_v56 = vadd.f32 %v2407_v26, %v1040_v29  ;;  %v1124_v18 = vadd.f32 %v1123_v16, %v1103_v21  ;;  %v1105_v9 = vmul.f32 %v2407_v26, %v3602_v53 }
 0x1ff   :  { %2414 = vpow2.f32 %v1443_v22  ;;  %v3638_v61 = vpop.permute.xlu0 %1390  ;;  %v1029_v1 = vrot.slane %v1028_v24, 4  ;;  %v1112_v15 = vadd.f32 %v1111_v47, %v1104_v23  ;;  %v1429_v6 = vsub.f32 %v1405_v42, %v3391_v57 }
 0x200   :  { %v1430_v39 = vsub.f32 %v1406_v11, %v3394_v43  ;;  %v1042_v4 = vrot.slane %v1041_v56, 4  ;;  %v1125_v14 = vadd.f32 %v1124_v18, %v1105_v9  ;;  %v1407_v0 = vmul.f32 %v4244_v50, %v1371_v38 }
 0x201   :  { %v1408_v7 = vmul.f32 %v4245_v46, %v1371_v38  ;;  %v3644_v35 = vpop.permute.xlu1 %1503  ;;  %v1030_v20 = vadd.f32 %v1029_v1, %v1028_v24  ;;  %v1113_v32 = vrot.slane %v1112_v15, 4  ;;  %v1449_v53 = vmul.f32 1.442695, %v1429_v6 }
 0x202   :  { %v1451_v10 = vmul.f32 1.442695, %v1430_v39  ;;  %v1043_v5 = vadd.f32 %v1042_v4, %v1041_v56  ;;  %v1126_v19 = vrot.slane %v1125_v14, 4  ;;  %v1431_v58 = vsub.f32 %v1407_v0, %v3391_v57 }
 0x203   :  { %v1432_v62 = vsub.f32 %v1408_v7, %v3394_v43  ;;  %v3648_v27 = vpop.permute.xlu0 %1508  ;;  %v1031_v41 = vrot.slane %v1030_v20, 2  ;;  %v1114_v37 = vadd.f32 %v1113_v32, %v1112_v15  ;;  %2416 = vpow2.f32 %v1449_v53 }
 0x204   :  { %v1409_v38 = vmul.f32 %v4244_v50, %v3624_v33  ;;  %v1044_v25 = vrot.slane %v1043_v5, 2  ;;  %v1127_v31 = vadd.f32 %v1126_v19, %v1125_v14  ;;  %2418 = vpow2.f32 %v1451_v10 }
 0x205   :  { %v1453_v40 = vmul.f32 1.442695, %v1431_v58  ;;  %v3652_v17 = vpop.permute.xlu1 %1513  ;;  %v2409_v16 = vpop.eup %2408  ;;  %v3654_v51 = vadd.f32 %v1031_v41, %v1030_v20  ;;  %v1115_v28 = vrot.slane %v1114_v37, 2  ;;  %v1455_v52 = vmul.f32 1.442695, %v1432_v62 }
 0x206   :  { %v1410_v22 = vmul.f32 %v4245_v46, %v3624_v33  ;;  %v3658_v13 = vadd.f32 %v1044_v25, %v1043_v5  ;;  %v1128_v29 = vrot.slane %v1127_v31, 2  ;;  %v1433_v21 = vsub.f32 %v1409_v38, %v3391_v57 }
 0x207   :  { %v2411_v42 = vpop.eup %2410  ;;  %2420 = vpow2.f32 %v1453_v40  ;;  %v3661_v47 = vpop.permute.xlu0 %1518  ;;  %v1116_v24 = vadd.f32 %v1115_v28, %v1114_v37  ;;  %v1411_v11 = vmul.f32 %v4244_v50, %v3629_v55  ;;  %v1412_v1 = vmul.f32 %v4245_v46, %v3629_v55 }
 0x208   :  { %v2413_v26 = vpop.eup %2412  ;;  %2422 = vpow2.f32 %v1455_v52  ;;  %v1434_v23 = vsub.f32 %v1410_v22, %v3394_v43  ;;  %v1129_v18 = vadd.f32 %v1128_v29, %v1127_v31  ;;  %v1457_v9 = vmul.f32 1.442695, %v1433_v21 }
 0x209   :  { %v2415_v56 = vpop.eup %2414  ;;  %v1473_v33 = vadd.f32 %v2413_v26, %v2409_v16  ;;  %v3668_v15 = vpop.permute.xlu1 %1523  ;;  %v1117_v6 = vrot.slane %v1116_v24, 1  ;;  %v1435_v14 = vsub.f32 %v1411_v11, %v3391_v57  ;;  %v1436_v7 = vsub.f32 %v1412_v1, %v3394_v43 }
 0x20a   :  { %v1486_v39 = vadd.f32 %v2415_v56, %v2411_v42  ;;  %v1459_v4 = vmul.f32 1.442695, %v1434_v23  ;;  %v1130_v0 = vrot.slane %v1129_v18, 1  ;;  %2424 = vpow2.f32 %v1457_v9 }
 0x20b   :  { %v1413_v20 = vmul.f32 %v4244_v50, %v3633_v2  ;;  %v3674_v32 = vpop.permute.xlu0 %1528  ;;  %v3676_v53 = vadd.f32 %v1117_v6, %v1116_v24  ;;  %v1461_v55 = vmul.f32 1.442695, %v1435_v14  ;;  %v1414_v10 = vmul.f32 %v4245_v46, %v3633_v2 }
 0x20c   :  { %2426 = vpow2.f32 %v1459_v4  ;;  %v3680_v5 = vadd.f32 %v1130_v0, %v1129_v18  ;;  %v1463_v19 = vmul.f32 1.442695, %v1436_v7  ;;  %v1415_v62 = vmul.f32 %v4244_v50, %v3638_v61 }
 0x20d   :  { %v1437_v58 = vsub.f32 %v1413_v20, %v3391_v57  ;;  %v3685_v41 = vpop.permute.xlu1 %1533  ;;  %v2417_v37 = vpop.eup %2416  ;;  %2428 = vpow2.f32 %v1461_v55  ;;  %v1438_v38 = vsub.f32 %v1414_v10, %v3394_v43  ;;  %v1416_v25 = vmul.f32 %v4245_v46, %v3638_v61 }
 0x20e   :  { %4246 = vst [vmem:[#allocation14_spill] sm:$0xff] %v3680_v5  ;;  %v1541_v31 = vmul.f32 %v2413_v26, %v3644_v35  ;;  %v2419_v2 = vpop.eup %2418  ;;  %v1474_v40 = vadd.f32 %v2417_v37, %v1473_v33  ;;  %2430 = vpow2.f32 %v1463_v19  ;;  %v1439_v52 = vsub.f32 %v1415_v62, %v3391_v57 }
 0x20f   :  { %v1465_v28 = vmul.f32 1.442695, %v1437_v58  ;;  %v3692_v22 = vpop.permute.xlu0 %1538  ;;  %v1487_v29 = vadd.f32 %v2419_v2, %v1486_v39  ;;  %v1467_v21 = vmul.f32 1.442695, %v1438_v38  ;;  %v1440_v24 = vsub.f32 %v1416_v25, %v3394_v43 }
 0x210   :  { %v1542_v23 = vmul.f32 %v2415_v56, %v3644_v35  ;;  %v1469_v18 = vmul.f32 1.442695, %v1439_v52  ;;  %v1543_v61 = vmul.f32 %v2409_v16, %v3648_v27  ;;  %v1544_v26 = vmul.f32 %v2411_v42, %v3648_v27 }
 0x211   :  { %v2421_v11 = vpop.eup %2420  ;;  %2432 = vpow2.f32 %v1465_v28  ;;  %v1588_v33 = vpop.permute.xlu1 %1587  ;;  %v1471_v6 = vmul.f32 1.442695, %v1440_v24  ;;  %v1545_v4 = vmul.f32 %v2417_v37, %v3652_v17  ;;  %v1546_v35 = vmul.f32 %v2419_v2, %v3652_v17 }
 0x212   :  { %v2423_v9 = vpop.eup %2422  ;;  %v1475_v1 = vadd.f32 %v2421_v11, %v1474_v40  ;;  %2434 = vpow2.f32 %v1467_v21  ;;  %v1557_v14 = vadd.f32 %v1543_v61, %v1541_v31  ;;  %v1570_v0 = vadd.f32 %v1544_v26, %v1542_v23 }
 0x213   :  { %v1488_v39 = vadd.f32 %v2423_v9, %v1487_v29  ;;  %2436 = vpow2.f32 %v1469_v18  ;;  %v1593_v7 = vpop.permute.xlu0 %1592  ;;  %v1547_v56 = vmul.f32 %v2421_v11, %v3661_v47  ;;  %v1548_v16 = vmul.f32 %v2423_v9, %v3661_v47 }
 0x214   :  { %2438 = vpow2.f32 %v1471_v6  ;;  %v2425_v27 = vpop.eup %2424  ;;  %v1558_v42 = vadd.f32 %v1557_v14, %v1545_v4  ;;  %v1625_v20 = vmul.f32 %v1588_v33, %v4244_v50  ;;  %v1626_v55 = vmul.f32 %v1588_v33, %v4245_v46 }
 0x215   :  { %v1627_v10 = vmul.f32 %v1593_v7, %v4244_v50  ;;  %v1598_v19 = vpop.permute.xlu1 %1597  ;;  %v1476_v62 = vadd.f32 %v2425_v27, %v1475_v1  ;;  %v1571_v37 = vadd.f32 %v1570_v0, %v1546_v35  ;;  %v1549_v38 = vmul.f32 %v2425_v27, %v3668_v15 }
 0x216   :  { %v2427_v58 = vpop.eup %2426  ;;  %v1628_v17 = vmul.f32 %v1593_v7, %v4245_v46  ;;  %v1559_v31 = vadd.f32 %v1558_v42, %v1547_v56  ;;  %v1641_v2 = vsub.f32 %v1625_v20, %v3391_v57  ;;  %v1642_v29 = vsub.f32 %v1626_v55, %v3394_v43 }
 0x217   :  { %v1489_v25 = vadd.f32 %v2427_v58, %v1488_v39  ;;  %v1550_v47 = vmul.f32 %v2427_v58, %v3668_v15  ;;  %v1603_v40 = vpop.permute.xlu0 %1602  ;;  %v2429_v28 = vpop.eup %2428  ;;  %v1572_v52 = vadd.f32 %v1571_v37, %v1548_v16  ;;  %v1643_v21 = vsub.f32 %v1627_v10, %v3391_v57 }
 0x218   :  { %v1644_v24 = vsub.f32 %v1628_v17, %v3394_v43  ;;  %v2431_v23 = vpop.eup %2430  ;;  %v1477_v11 = vadd.f32 %v2429_v28, %v1476_v62  ;;  %v1560_v18 = vadd.f32 %v1559_v31, %v1549_v38  ;;  %v1551_v61 = vmul.f32 %v2429_v28, %v3674_v32 }
 0x219   :  { %v1657_v26 = vmul.f32 1.442695, %v1641_v2  ;;  %v3713_v33 = vpop.permute.xlu1 %1607  ;;  %v1490_v15 = vadd.f32 %v2431_v23, %v1489_v25  ;;  %v1573_v9 = vadd.f32 %v1572_v52, %v1550_v47  ;;  %v1552_v1 = vmul.f32 %v2431_v23, %v3674_v32 }
 0x21a   :  { %v1659_v6 = vmul.f32 1.442695, %v1642_v29  ;;  %v1561_v39 = vadd.f32 %v1560_v18, %v1551_v61  ;;  %v1661_v14 = vmul.f32 1.442695, %v1643_v21  ;;  %v1663_v0 = vmul.f32 1.442695, %v1644_v24 }
 0x21b   :  { %v2433_v4 = vpop.eup %2432  ;;  %2440 = vpow2.f32 %v1657_v26  ;;  %v3716_v7 = vpop.permute.xlu0 %1612  ;;  %v1574_v16 = vadd.f32 %v1573_v9, %v1552_v1  ;;  %v1629_v32 = vmul.f32 %v1598_v19, %v4244_v50  ;;  %v1630_v47 = vmul.f32 %v1598_v19, %v4245_v46 }
 0x21c   :  { %v2435_v35 = vpop.eup %2434  ;;  %v1478_v56 = vadd.f32 %v2433_v4, %v1477_v11  ;;  %v1553_v27 = vmul.f32 %v2433_v4, %v3685_v41  ;;  %2442 = vpow2.f32 %v1659_v6  ;;  %v1631_v29 = vmul.f32 %v1603_v40, %v4244_v50 }
 0x21d   :  { %v2437_v42 = vpop.eup %2436  ;;  %v1491_v20 = vadd.f32 %v2435_v35, %v1490_v15  ;;  %v1554_v55 = vmul.f32 %v2435_v35, %v3685_v41  ;;  %2444 = vpow2.f32 %v1661_v14  ;;  %v3721_v10 = vpop.permute.xlu1 %1617  ;;  %v1645_v52 = vsub.f32 %v1629_v32, %v3391_v57 }
 0x21e   :  { %v2439_v58 = vpop.eup %2438  ;;  %v1479_v62 = vadd.f32 %v2437_v42, %v1478_v56  ;;  %v1562_v37 = vadd.f32 %v1561_v39, %v1553_v27  ;;  %v1555_v38 = vmul.f32 %v2437_v42, %v3692_v22  ;;  %2446 = vpow2.f32 %v1663_v0 }
 0x21f   :  { %v1492_v17 = vadd.f32 %v2439_v58, %v1491_v20  ;;  %v1575_v25 = vadd.f32 %v1574_v16, %v1554_v55  ;;  %v1556_v31 = vmul.f32 %v2439_v58, %v3692_v22  ;;  %v3726_v2 = vpop.permute.xlu0 %1622  ;;  %v1646_v23 = vsub.f32 %v1630_v47, %v3394_v43 }
 0x220   :  { %v1480_v41 = vrot.slane %v1479_v62, 4  ;;  %v1563_v28 = vadd.f32 %v1562_v37, %v1555_v38  ;;  %v1632_v11 = vmul.f32 %v1603_v40, %v4245_v46  ;;  %v1665_v26 = vmul.f32 1.442695, %v1645_v52 }
 0x221   :  { %v1493_v21 = vrot.slane %v1492_v17, 4  ;;  %v1576_v24 = vadd.f32 %v1575_v25, %v1556_v31  ;;  %v3732_v18 = vpop.permute.xlu1 %1719  ;;  %v1647_v19 = vsub.f32 %v1631_v29, %v3391_v57  ;;  %v1667_v1 = vmul.f32 1.442695, %v1646_v23 }
 0x222   :  { %v1481_v61 = vadd.f32 %v1480_v41, %v1479_v62  ;;  %v1564_v22 = vrot.slane %v1563_v28, 4  ;;  %v1648_v6 = vsub.f32 %v1632_v11, %v3394_v43  ;;  %2448 = vpow2.f32 %v1665_v26 }
 0x223   :  { %v1494_v15 = vadd.f32 %v1493_v21, %v1492_v17  ;;  %v1577_v9 = vrot.slane %v1576_v24, 4  ;;  %v3736_v4 = vpop.permute.xlu0 %1724  ;;  %v1669_v0 = vmul.f32 1.442695, %v1647_v19  ;;  %2450 = vpow2.f32 %v1667_v1 }
 0x224   :  { %v1482_v39 = vrot.slane %v1481_v61, 2  ;;  %v1565_v14 = vadd.f32 %v1564_v22, %v1563_v28  ;;  %v1671_v16 = vmul.f32 1.442695, %v1648_v6  ;;  %v1633_v32 = vmul.f32 %v3713_v33, %v4244_v50 }
 0x225   :  { %v2441_v35 = vpop.eup %2440  ;;  %v1495_v40 = vrot.slane %v1494_v15, 2  ;;  %v1578_v56 = vadd.f32 %v1577_v9, %v1576_v24  ;;  %v3738_v27 = vpop.permute.xlu1 %1729  ;;  %2452 = vpow2.f32 %v1669_v0  ;;  %v1634_v38 = vmul.f32 %v3713_v33, %v4245_v46 }
 0x226   :  { %v3740_v42 = vpop.eup %2442  ;;  %v1483_v20 = vadd.f32 %v1482_v39, %v1481_v61  ;;  %v1566_v55 = vrot.slane %v1565_v14, 2  ;;  %2454 = vpow2.f32 %v1671_v16  ;;  %v1649_v28 = vsub.f32 %v1633_v32, %v3391_v57 }
 0x227   :  { %v2445_v58 = vpop.eup %2444  ;;  %v1496_v62 = vadd.f32 %v1495_v40, %v1494_v15  ;;  %v1579_v37 = vrot.slane %v1578_v56, 2  ;;  %v3746_v17 = vpop.permute.xlu0 %1734  ;;  %v1650_v24 = vsub.f32 %v1634_v38, %v3394_v43  ;;  %v1635_v22 = vmul.f32 %v3716_v7, %v4244_v50 }
 0x228   :  { %v2447_v25 = vpop.eup %2446  ;;  %v1484_v31 = vrot.slane %v1483_v20, 1  ;;  %v1567_v47 = vadd.f32 %v1566_v55, %v1565_v14  ;;  %v1689_v41 = vadd.f32 %v2445_v58, %v2441_v35  ;;  %v1673_v33 = vmul.f32 1.442695, %v1649_v28 }
 0x229   :  { %v1497_v52 = vrot.slane %v1496_v62, 1  ;;  %v1580_v29 = vadd.f32 %v1579_v37, %v1578_v56  ;;  %v1702_v21 = vadd.f32 %v2447_v25, %v3740_v42  ;;  %v3751_v23 = vpop.permute.xlu1 %1739  ;;  %v1675_v15 = vmul.f32 1.442695, %v1650_v24 }
 0x22a   :  { %v3753_v11 = vadd.f32 %v1484_v31, %v1483_v20  ;;  %v1568_v61 = vrot.slane %v1567_v47, 1  ;;  %v1636_v9 = vmul.f32 %v3716_v7, %v4245_v46  ;;  %2456 = vpow2.f32 %v1673_v33 }
 0x22b   :  { %v3757_v26 = vadd.f32 %v1497_v52, %v1496_v62  ;;  %v1581_v19 = vrot.slane %v1580_v29, 1  ;;  %v3761_v1 = vpop.permute.xlu0 %1744  ;;  %v1651_v39 = vsub.f32 %v1635_v22, %v3391_v57  ;;  %v1637_v14 = vmul.f32 %v3721_v10, %v4244_v50 }
 0x22c   :  { %4247 = vst [vmem:[#allocation15_spill] sm:$0xff] %v3753_v11  ;;  %v3763_v6 = vadd.f32 %v1568_v61, %v1567_v47  ;;  %2458 = vpow2.f32 %v1675_v15  ;;  %v1652_v40 = vsub.f32 %v1636_v9, %v3394_v43  ;;  %v1638_v56 = vmul.f32 %v3721_v10, %v4245_v46  ;;  %v2449_v7 = vpop.eup %2448 }
 0x22d   :  { %4248 = vst [vmem:[#allocation16_spill] sm:$0xff] %v3757_v26  ;;  %v3768_v0 = vadd.f32 %v1581_v19, %v1580_v29  ;;  %v3773_v16 = vpop.permute.xlu1 %1749  ;;  %v1677_v20 = vmul.f32 1.442695, %v1651_v39  ;;  %v1653_v55 = vsub.f32 %v1637_v14, %v3391_v57  ;;  %v1639_v32 = vmul.f32 %v3726_v2, %v4244_v50  ;;  %v2451_v37 = vpop.eup %2450 }
 0x22e   :  { %v1640_v62 = vmul.f32 %v3726_v2, %v4245_v46  ;;  %v1690_v38 = vadd.f32 %v2449_v7, %v1689_v41  ;;  %v1679_v31 = vmul.f32 1.442695, %v1652_v40  ;;  %v1654_v47 = vsub.f32 %v1638_v56, %v3394_v43 }
 0x22f   :  { %v1757_v28 = vmul.f32 %v2441_v35, %v3732_v18  ;;  %v1804_v10 = vpop.permute.xlu0 %1803  ;;  %v2453_v52 = vpop.eup %2452  ;;  %v1703_v29 = vadd.f32 %v2451_v37, %v1702_v21  ;;  %2460 = vpow2.f32 %v1677_v20  ;;  %v1681_v24 = vmul.f32 1.442695, %v1653_v55 }
 0x230   :  { %v1655_v61 = vsub.f32 %v1639_v32, %v3391_v57  ;;  %v2455_v33 = vpop.eup %2454  ;;  %v1691_v22 = vadd.f32 %v2453_v52, %v1690_v38  ;;  %2462 = vpow2.f32 %v1679_v31  ;;  %v1683_v19 = vmul.f32 1.442695, %v1654_v47 }
 0x231   :  { %v1656_v2 = vsub.f32 %v1640_v62, %v3394_v43  ;;  %v1809_v15 = vpop.permute.xlu1 %1808  ;;  %v1704_v41 = vadd.f32 %v2455_v33, %v1703_v29  ;;  %2464 = vpow2.f32 %v1681_v24  ;;  %v1758_v35 = vmul.f32 %v3740_v42, %v3732_v18 }
 0x232   :  { %v1685_v9 = vmul.f32 1.442695, %v1655_v61  ;;  %2466 = vpow2.f32 %v1683_v19  ;;  %v1759_v21 = vmul.f32 %v2445_v58, %v3736_v4  ;;  %v1760_v14 = vmul.f32 %v2447_v25, %v3736_v4 }
 0x233   :  { %v1687_v39 = vmul.f32 1.442695, %v1656_v2  ;;  %v1814_v40 = vpop.permute.xlu0 %1813  ;;  %v1761_v56 = vmul.f32 %v2449_v7, %v3738_v27  ;;  %v1762_v20 = vmul.f32 %v2451_v37, %v3738_v27  ;;  %v1763_v55 = vmul.f32 %v2453_v52, %v3746_v17 }
 0x234   :  { %2468 = vpow2.f32 %v1685_v9  ;;  %v1773_v32 = vadd.f32 %v1759_v21, %v1757_v28  ;;  %v1786_v62 = vadd.f32 %v1760_v14, %v1758_v35  ;;  %v1764_v38 = vmul.f32 %v2455_v33, %v3746_v17  ;;  %v2457_v42 = vpop.eup %2456 }
 0x235   :  { %2470 = vpow2.f32 %v1687_v39  ;;  %v2020_v18 = vpop.permute.xlu1 %2019  ;;  %v1841_v31 = vmul.f32 %v1804_v10, %v4244_v50  ;;  %v1842_v58 = vmul.f32 %v1804_v10, %v4245_v46  ;;  %v1843_v4 = vmul.f32 %v1809_v15, %v4244_v50 }
 0x236   :  { %v1844_v25 = vmul.f32 %v1809_v15, %v4245_v46  ;;  %v2459_v7 = vpop.eup %2458  ;;  %v1692_v47 = vadd.f32 %v2457_v42, %v1691_v22  ;;  %v1774_v27 = vadd.f32 %v1773_v32, %v1761_v56  ;;  %v1787_v37 = vadd.f32 %v1786_v62, %v1762_v20 }
 0x237   :  { %v1765_v52 = vmul.f32 %v2457_v42, %v3751_v23  ;;  %v2025_v28 = vpop.permute.xlu0 %2024  ;;  %v1705_v29 = vadd.f32 %v2459_v7, %v1704_v41  ;;  %v1766_v17 = vmul.f32 %v2459_v7, %v3751_v23  ;;  %v1857_v24 = vsub.f32 %v1841_v31, %v3391_v57 }
 0x238   :  { %v1858_v61 = vsub.f32 %v1842_v58, %v3394_v43  ;;  %v1775_v33 = vadd.f32 %v1774_v27, %v1763_v55  ;;  %v1788_v10 = vadd.f32 %v1787_v37, %v1764_v38  ;;  %v1859_v19 = vsub.f32 %v1843_v4, %v3391_v57 }
 0x239   :  { %v1860_v2 = vsub.f32 %v1844_v25, %v3394_v43  ;;  %v3802_v15 = vpop.permute.xlu1 %1818  ;;  %v2461_v22 = vpop.eup %2460  ;;  %v1873_v9 = vmul.f32 1.442695, %v1857_v24  ;;  %v1845_v39 = vmul.f32 %v1814_v40, %v4244_v50  ;;  %v1846_v41 = vmul.f32 %v1814_v40, %v4245_v46 }
 0x23a   :  { %v1875_v35 = vmul.f32 1.442695, %v1858_v61  ;;  %v2463_v23 = vpop.eup %2462  ;;  %v1693_v21 = vadd.f32 %v2461_v22, %v1692_v47  ;;  %v1776_v14 = vadd.f32 %v1775_v33, %v1765_v52  ;;  %v1789_v56 = vadd.f32 %v1788_v10, %v1766_v17 }
 0x23b   :  { %v1767_v20 = vmul.f32 %v2461_v22, %v3761_v1  ;;  %v3807_v55 = vpop.permute.xlu0 %2029  ;;  %v2465_v32 = vpop.eup %2464  ;;  %v1706_v62 = vadd.f32 %v2463_v23, %v1705_v29  ;;  %v1768_v38 = vmul.f32 %v2463_v23, %v3761_v1  ;;  %2472 = vpow2.f32 %v1873_v9 }
 0x23c   :  { %v1877_v42 = vmul.f32 1.442695, %v1859_v19  ;;  %v2467_v31 = vpop.eup %2466  ;;  %v1694_v58 = vadd.f32 %v2465_v32, %v1693_v21  ;;  %v1769_v25 = vmul.f32 %v2465_v32, %v3773_v16  ;;  %2474 = vpow2.f32 %v1875_v35 }
 0x23d   :  { %v1777_v4 = vadd.f32 %v1776_v14, %v1767_v20  ;;  %v3811_v40 = vpop.permute.xlu1 %1823  ;;  %v1707_v47 = vadd.f32 %v2467_v31, %v1706_v62  ;;  %v1790_v27 = vadd.f32 %v1789_v56, %v1768_v38  ;;  %v1770_v37 = vmul.f32 %v2467_v31, %v3773_v16 }
 0x23e   :  { %v3813_v7 = vpop.eup %2468  ;;  %2476 = vpow2.f32 %v1877_v42  ;;  %v1879_v17 = vmul.f32 1.442695, %v1860_v2  ;;  %v1861_v24 = vsub.f32 %v1845_v39, %v3391_v57  ;;  %v1862_v19 = vsub.f32 %v1846_v41, %v3394_v43 }
 0x23f   :  { %v3816_v52 = vpop.eup %2470  ;;  %v1695_v1 = vadd.f32 %v3813_v7, %v1694_v58  ;;  %v3819_v29 = vadd.f32 %v1777_v4, %v1769_v25  ;;  %v3822_v61 = vpop.permute.xlu0 %2034  ;;  %v3825_v10 = vadd.f32 %v1790_v27, %v1770_v37  ;;  %v2057_v16 = vmul.f32 %v2020_v18, %v4244_v50 }
 0x240   :  { %v1708_v33 = vadd.f32 %v3816_v52, %v1707_v47  ;;  %2478 = vpow2.f32 %v1879_v17  ;;  %v1881_v9 = vmul.f32 1.442695, %v1861_v24  ;;  %v2058_v35 = vmul.f32 %v2020_v18, %v4245_v46 }
 0x241   :  { %v1696_v22 = vrot.slane %v1695_v1, 4  ;;  %v3830_v23 = vpop.permute.xlu1 %1828  ;;  %v1883_v21 = vmul.f32 1.442695, %v1862_v19  ;;  %v2073_v39 = vsub.f32 %v2057_v16, %v3391_v57  ;;  %v2059_v14 = vmul.f32 %v2025_v28, %v4244_v50 }
 0x242   :  { %v1709_v2 = vrot.slane %v1708_v33, 4  ;;  %2480 = vpow2.f32 %v1881_v9  ;;  %v2074_v20 = vsub.f32 %v2058_v35, %v3394_v43  ;;  %v2060_v41 = vmul.f32 %v2025_v28, %v4245_v46 }
 0x243   :  { %v1697_v56 = vadd.f32 %v1696_v22, %v1695_v1  ;;  %v3836_v32 = vpop.permute.xlu0 %2039  ;;  %2482 = vpow2.f32 %v1883_v21  ;;  %v2089_v38 = vmul.f32 1.442695, %v2073_v39  ;;  %v2075_v18 = vsub.f32 %v2059_v14, %v3391_v57 }
 0x244   :  { %v1710_v62 = vadd.f32 %v1709_v2, %v1708_v33  ;;  %v2091_v31 = vmul.f32 1.442695, %v2074_v20  ;;  %v2076_v58 = vsub.f32 %v2060_v41, %v3394_v43  ;;  %v1847_v4 = vmul.f32 %v3802_v15, %v4244_v50 }
 0x245   :  { %v1698_v42 = vrot.slane %v1697_v56, 2  ;;  %v3842_v25 = vpop.permute.xlu1 %1833  ;;  %v3844_v47 = vpop.eup %2472  ;;  %2484 = vpow2.f32 %v2089_v38  ;;  %v2093_v28 = vmul.f32 1.442695, %v2075_v18  ;;  %v1848_v37 = vmul.f32 %v3802_v15, %v4245_v46 }
 0x246   :  { %v1711_v27 = vrot.slane %v1710_v62, 2  ;;  %v3848_v1 = vpop.eup %2474  ;;  %2486 = vpow2.f32 %v2091_v31  ;;  %v2095_v24 = vmul.f32 1.442695, %v2076_v58  ;;  %v1863_v33 = vsub.f32 %v1847_v4, %v3391_v57 }
 0x247   :  { %v1699_v17 = vadd.f32 %v1698_v42, %v1697_v56  ;;  %v3851_v19 = vpop.permute.xlu0 %2044  ;;  %2488 = vpow2.f32 %v2093_v28  ;;  %v1864_v9 = vsub.f32 %v1848_v37, %v3394_v43  ;;  %v2061_v35 = vmul.f32 %v3807_v55, %v4244_v50 }
 0x248   :  { %v3853_v16 = vpop.eup %2476  ;;  %v1712_v22 = vadd.f32 %v1711_v27, %v1710_v62  ;;  %2490 = vpow2.f32 %v2095_v24  ;;  %v1885_v21 = vmul.f32 1.442695, %v1863_v33  ;;  %v2062_v20 = vmul.f32 %v3807_v55, %v4245_v46 }
 0x249   :  { %v1700_v2 = vrot.slane %v1699_v17, 1  ;;  %v1905_v15 = vadd.f32 %v3853_v16, %v3844_v47  ;;  %v3860_v39 = vpop.permute.xlu1 %1838  ;;  %v1887_v56 = vmul.f32 1.442695, %v1864_v9  ;;  %v2077_v41 = vsub.f32 %v2061_v35, %v3391_v57 }
 0x24a   :  { %v1713_v14 = vrot.slane %v1712_v22, 1  ;;  %v3865_v62 = vpop.eup %2478  ;;  %2492 = vpow2.f32 %v1885_v21  ;;  %v1849_v18 = vmul.f32 %v3811_v40, %v4244_v50  ;;  %v1850_v42 = vmul.f32 %v3811_v40, %v4245_v46 }
 0x24b   :  { %v3867_v38 = vadd.f32 %v1700_v2, %v1699_v17  ;;  %v3873_v31 = vpop.permute.xlu0 %2049  ;;  %v1918_v55 = vadd.f32 %v3865_v62, %v3848_v1  ;;  %2494 = vpow2.f32 %v1887_v56  ;;  %v2078_v4 = vsub.f32 %v2062_v20, %v3394_v43 }
 0x24c   :  { %v3875_v58 = vadd.f32 %v1713_v14, %v1712_v22  ;;  %v3880_v27 = vpop.eup %2480  ;;  %v2097_v28 = vmul.f32 1.442695, %v2077_v41  ;;  %v1865_v37 = vsub.f32 %v1849_v18, %v3391_v57  ;;  %v1866_v17 = vsub.f32 %v1850_v42, %v3394_v43 }
 0x24d   :  { %4249 = vst [vmem:[#allocation33_spill] sm:$0xff] %v3867_v38  ;;  %v2063_v40 = vmul.f32 %v3822_v61, %v4244_v50  ;;  %v3886_v24 = vpop.permute.xlu1 %2054  ;;  %v3888_v33 = vpop.eup %2482  ;;  %v1906_v22 = vadd.f32 %v3880_v27, %v1905_v15  ;;  %v2099_v9 = vmul.f32 1.442695, %v2078_v4  ;;  %v2064_v35 = vmul.f32 %v3822_v61, %v4245_v46 }
 0x24e   :  { %4250 = vst [vmem:[#allocation11_spill] sm:$0xff] %v3875_v58  ;;  %v1851_v2 = vmul.f32 %v3830_v23, %v4244_v50  ;;  %v1919_v21 = vadd.f32 %v3888_v33, %v1918_v55  ;;  %2496 = vpow2.f32 %v2097_v28  ;;  %v1889_v14 = vmul.f32 1.442695, %v1865_v37 }
 0x24f   :  { %v1891_v56 = vmul.f32 1.442695, %v1866_v17  ;;  %v3896_v20 = vpop.permute.xlu0 %1935  ;;  %v3898_v41 = vpop.eup %2484  ;;  %2498 = vpow2.f32 %v2099_v9  ;;  %v2079_v18 = vsub.f32 %v2063_v40, %v3391_v57  ;;  %v2080_v15 = vsub.f32 %v2064_v35, %v3394_v43 }
 0x250   :  { %v1852_v61 = vmul.f32 %v3830_v23, %v4245_v46  ;;  %v3904_v42 = vpop.eup %2486  ;;  %2500 = vpow2.f32 %v1889_v14  ;;  %v1867_v55 = vsub.f32 %v1851_v2, %v3391_v57  ;;  %v2065_v4 = vmul.f32 %v3836_v32, %v4244_v50 }
 0x251   :  { %v2066_v28 = vmul.f32 %v3836_v32, %v4245_v46  ;;  %v3911_v37 = vpop.permute.xlu1 %1940  ;;  %v3913_v17 = vpop.eup %2488  ;;  %2502 = vpow2.f32 %v1891_v56  ;;  %v2101_v40 = vmul.f32 1.442695, %v2079_v18  ;;  %v2103_v9 = vmul.f32 1.442695, %v2080_v15 }
 0x252   :  { %v1868_v23 = vsub.f32 %v1852_v61, %v3394_v43  ;;  %v3916_v35 = vpop.eup %2490  ;;  %v2121_v2 = vadd.f32 %v3913_v17, %v3898_v41  ;;  %v1893_v14 = vmul.f32 1.442695, %v1867_v55  ;;  %v2081_v59 = vsub.f32 %v2065_v4, %v3391_v57 }
 0x253   :  { %v2082_v63 = vsub.f32 %v2066_v28, %v3394_v43  ;;  %v3922_v32 = vpop.permute.xlu0 %1945  ;;  %v2134_v60 = vadd.f32 %v3916_v35, %v3904_v42  ;;  %2504 = vpow2.f32 %v2101_v40  ;;  %v1853_v18 = vmul.f32 %v3842_v25, %v4244_v50 }
 0x254   :  { %v1895_v56 = vmul.f32 1.442695, %v1868_v23  ;;  %v3928_v15 = vpop.eup %2492  ;;  %2506 = vpow2.f32 %v2103_v9  ;;  %v2105_v61 = vmul.f32 1.442695, %v2081_v59  ;;  %v1854_v55 = vmul.f32 %v3842_v25, %v4245_v46 }
 0x255   :  { %v2107_v36 = vmul.f32 1.442695, %v2082_v63  ;;  %v3932_v4 = vpop.permute.xlu1 %2151  ;;  %v3934_v28 = vpop.eup %2494  ;;  %v1907_v48 = vadd.f32 %v3928_v15, %v1906_v22  ;;  %2508 = vpow2.f32 %v1893_v14  ;;  %v1869_v40 = vsub.f32 %v1853_v18, %v3391_v57 }
 0x256   :  { %v2067_v23 = vmul.f32 %v3851_v19, %v4244_v50  ;;  %v1920_v3 = vadd.f32 %v3934_v28, %v1919_v21  ;;  %2510 = vpow2.f32 %v1895_v56  ;;  %v1870_v63 = vsub.f32 %v1854_v55, %v3394_v43 }
 0x257   :  { %v2068_v59 = vmul.f32 %v3851_v19, %v4245_v46  ;;  %v3944_v25 = vpop.permute.xlu0 %2156  ;;  %2512 = vpow2.f32 %v2105_v61  ;;  %v1897_v9 = vmul.f32 1.442695, %v1869_v40  ;;  %v1855_v14 = vmul.f32 %v3860_v39, %v4244_v50 }
 0x258   :  { %v2083_v22 = vsub.f32 %v2067_v23, %v3391_v57  ;;  %v3949_v18 = vpop.eup %2496  ;;  %2514 = vpow2.f32 %v2107_v36  ;;  %v1899_v58 = vmul.f32 1.442695, %v1870_v63  ;;  %v1856_v56 = vmul.f32 %v3860_v39, %v4245_v46 }
 0x259   :  { %v2084_v21 = vsub.f32 %v2068_v59, %v3394_v43  ;;  %v3954_v55 = vpop.permute.xlu1 %1950  ;;  %v3956_v19 = vpop.eup %2498  ;;  %v2122_v61 = vadd.f32 %v3949_v18, %v2121_v2  ;;  %2516 = vpow2.f32 %v1897_v9  ;;  %v1871_v23 = vsub.f32 %v1855_v14, %v3391_v57 }
 0x25a   :  { %v2109_v40 = vmul.f32 1.442695, %v2083_v22  ;;  %v3960_v26 = vpop.eup %2500  ;;  %v2135_v36 = vadd.f32 %v3956_v19, %v2134_v60  ;;  %2518 = vpow2.f32 %v1899_v58  ;;  %v1872_v59 = vsub.f32 %v1856_v56, %v3394_v43 }
 0x25b   :  { %v2111_v63 = vmul.f32 1.442695, %v2084_v21  ;;  %v3964_v38 = vpop.permute.xlu0 %2161  ;;  %v3966_v39 = vpop.eup %2502  ;;  %v1908_v11 = vadd.f32 %v3960_v26, %v1907_v48  ;;  %v1901_v2 = vmul.f32 1.442695, %v1871_v23  ;;  %v2069_v9 = vmul.f32 %v3873_v31, %v4244_v50 }
 0x25c   :  { %2520 = vpow2.f32 %v2109_v40  ;;  %v1921_v22 = vadd.f32 %v3966_v39, %v1920_v3  ;;  %v1903_v14 = vmul.f32 1.442695, %v1872_v59  ;;  %v2070_v60 = vmul.f32 %v3873_v31, %v4245_v46 }
 0x25d   :  { %2522 = vpow2.f32 %v2111_v63  ;;  %v3974_v58 = vpop.eup %2504  ;;  %v2085_v21 = vsub.f32 %v2069_v9, %v3391_v57  ;;  %v2071_v48 = vmul.f32 %v3886_v24, %v4244_v50  ;;  %v2072_v56 = vmul.f32 %v3886_v24, %v4245_v46  ;;  %v3981_v40 = vpop.permute.xlu1 %1955 }
 0x25e   :  { %2524 = vpow2.f32 %v1901_v2  ;;  %v3983_v23 = vpop.eup %2506  ;;  %v2123_v3 = vadd.f32 %v3974_v58, %v2122_v61  ;;  %v2086_v31 = vsub.f32 %v2070_v60, %v3394_v43  ;;  %v1973_v63 = vmul.f32 %v3844_v47, %v3896_v20 }
 0x25f   :  { %2526 = vpow2.f32 %v1903_v14  ;;  %v3989_v59 = vpop.permute.xlu0 %2166  ;;  %v3991_v2 = vpop.eup %2508  ;;  %v2136_v50 = vadd.f32 %v3983_v23, %v2135_v36  ;;  %v2113_v9 = vmul.f32 1.442695, %v2085_v21  ;;  %v2087_v46 = vsub.f32 %v2071_v48, %v3391_v57 }
 0x260   :  { %v2088_v24 = vsub.f32 %v2072_v56, %v3394_v43  ;;  %v3996_v5 = vpop.eup %2510  ;;  %v1909_v61 = vadd.f32 %v3991_v2, %v1908_v11  ;;  %v2115_v14 = vmul.f32 1.442695, %v2086_v31  ;;  %v1974_v60 = vmul.f32 %v3848_v1, %v3896_v20 }
 0x261   :  { %v1975_v47 = vmul.f32 %v3853_v16, %v3911_v37  ;;  %v4003_v8 = vpop.eup %2512  ;;  %v1922_v36 = vadd.f32 %v3996_v5, %v1921_v22  ;;  %2528 = vpow2.f32 %v2113_v9  ;;  %v2117_v21 = vmul.f32 1.442695, %v2087_v46  ;;  %v1961_v31 = vpop.permute.xlu1 %1960 }
 0x262   :  { %v2119_v57 = vmul.f32 1.442695, %v2088_v24  ;;  %v4006_v48 = vpop.eup %2514  ;;  %v2124_v43 = vadd.f32 %v4003_v8, %v2123_v3  ;;  %2530 = vpow2.f32 %v2115_v14  ;;  %v1976_v11 = vmul.f32 %v3865_v62, %v3911_v37 }
 0x263   :  { %v1989_v56 = vadd.f32 %v1975_v47, %v1973_v63  ;;  %v4011_v1 = vpop.eup %2516  ;;  %v2137_v16 = vadd.f32 %v4006_v48, %v2136_v50  ;;  %2532 = vpow2.f32 %v2117_v21  ;;  %v1977_v20 = vmul.f32 %v3880_v27, %v3922_v32  ;;  %v2172_v37 = vpop.permute.xlu0 %2171 }
 0x264   :  { %v1978_v22 = vmul.f32 %v3888_v33, %v3922_v32  ;;  %v4018_v9 = vpop.eup %2518  ;;  %v1910_v3 = vadd.f32 %v4011_v1, %v1909_v61  ;;  %2534 = vpow2.f32 %v2119_v57  ;;  %v2002_v46 = vadd.f32 %v1976_v11, %v1974_v60 }
 0x265   :  { %v2189_v62 = vmul.f32 %v3898_v41, %v3932_v4  ;;  %v1923_v50 = vadd.f32 %v4018_v9, %v1922_v36  ;;  %v1990_v24 = vadd.f32 %v1989_v56, %v1977_v20  ;;  %v2190_v27 = vmul.f32 %v3904_v42, %v3932_v4 }
 0x266   :  { %v4023_v63 = vpop.eup %2520  ;;  %v2191_v33 = vmul.f32 %v3913_v17, %v3944_v25  ;;  %v2003_v14 = vadd.f32 %v2002_v46, %v1978_v22  ;;  %v2192_v41 = vmul.f32 %v3916_v35, %v3944_v25  ;;  %v1979_v60 = vmul.f32 %v3928_v15, %v3954_v55 }
 0x267   :  { %v4030_v32 = vpop.eup %2522  ;;  %v2125_v61 = vadd.f32 %v4023_v63, %v2124_v43  ;;  %v1980_v42 = vmul.f32 %v3934_v28, %v3954_v55  ;;  %v2193_v17 = vmul.f32 %v3949_v18, %v3964_v38  ;;  %v2194_v15 = vmul.f32 %v3956_v19, %v3964_v38  ;;  %v1755_v28 = vpop.permute.xlu1 %1754 }
 0x268   :  { %v4037_v47 = vpop.eup %2524  ;;  %v2138_v36 = vadd.f32 %v4030_v32, %v2137_v16  ;;  %v2205_v21 = vadd.f32 %v2191_v33, %v2189_v62  ;;  %v2218_v43 = vadd.f32 %v2192_v41, %v2190_v27  ;;  %v1991_v35 = vadd.f32 %v1990_v24, %v1979_v60 }
 0x269   :  { %v4044_v4 = vpop.eup %2526  ;;  %v1911_v57 = vadd.f32 %v4037_v47, %v1910_v3  ;;  %v2004_v11 = vadd.f32 %v2003_v14, %v1980_v42  ;;  %v1981_v16 = vmul.f32 %v3960_v26, %v3981_v40  ;;  %v1982_v18 = vmul.f32 %v3966_v39, %v3981_v40  ;;  %v1966_v3 = vpop.permute.xlu0 %1965 }
 0x26a   :  { %v1924_v25 = vadd.f32 %v4044_v4, %v1923_v50  ;;  %v2206_v56 = vadd.f32 %v2205_v21, %v2193_v17  ;;  %v2219_v20 = vadd.f32 %v2218_v43, %v2194_v15  ;;  %v2195_v22 = vmul.f32 %v3974_v58, %v3989_v59 }
 0x26b   :  { %v1912_v55 = vrot.slane %v1911_v57, 4  ;;  %v2529_v46 = vpop.eup %2528  ;;  %v1992_v38 = vadd.f32 %v1991_v35, %v1981_v16  ;;  %v2196_v19 = vmul.f32 %v3983_v23, %v3989_v59  ;;  %v1983_v50 = vmul.f32 %v3991_v2, %v1961_v31 }
 0x26c   :  { %v1925_v62 = vrot.slane %v1924_v25, 4  ;;  %v2531_v24 = vpop.eup %2530  ;;  %v2126_v27 = vadd.f32 %v2529_v46, %v2125_v61  ;;  %v2005_v33 = vadd.f32 %v2004_v11, %v1982_v18  ;;  %v2207_v14 = vadd.f32 %v2206_v56, %v2195_v22  ;;  %v2177_v61 = vpop.permute.xlu1 %2176 }
 0x26d   :  { %v1913_v26 = vadd.f32 %v1912_v55, %v1911_v57  ;;  %v2533_v41 = vpop.eup %2532  ;;  %v2139_v39 = vadd.f32 %v2531_v24, %v2138_v36  ;;  %v2220_v40 = vadd.f32 %v2219_v20, %v2196_v19  ;;  %v1984_v58 = vmul.f32 %v3996_v5, %v1961_v31  ;;  %v1971_v56 = vpop.permute.xlu0 %1970 }
 0x26e   :  { %v1926_v60 = vadd.f32 %v1925_v62, %v1924_v25  ;;  %v2535_v21 = vpop.eup %2534  ;;  %v2127_v17 = vadd.f32 %v2533_v41, %v2126_v27  ;;  %v1993_v43 = vadd.f32 %v1992_v38, %v1983_v50  ;;  %v2197_v35 = vmul.f32 %v4003_v8, %v2172_v37 }
 0x26f   :  { %v1914_v42 = vrot.slane %v1913_v26, 2  ;;  %v2140_v59 = vadd.f32 %v2535_v21, %v2139_v39  ;;  %v2006_v2 = vadd.f32 %v2005_v33, %v1984_v58  ;;  %v2198_v57 = vmul.f32 %v4006_v48, %v2172_v37 }
 0x270   :  { %v1927_v23 = vrot.slane %v1926_v60, 2  ;;  %v2128_v11 = vrot.slane %v2127_v17, 4  ;;  %v2208_v25 = vadd.f32 %v2207_v14, %v2197_v35  ;;  %v1771_v36 = vmul.f32 %v3813_v7, %v1755_v28 }
 0x271   :  { %v4062_v15 = vadd.f32 %v1914_v42, %v1913_v26  ;;  %v2141_v31 = vrot.slane %v2140_v59, 4  ;;  %v2221_v16 = vadd.f32 %v2220_v40, %v2198_v57  ;;  %v1772_v55 = vmul.f32 %v3816_v52, %v1755_v28 }
 0x272   :  { %v4065_v5 = vadd.f32 %v1927_v23, %v1926_v60  ;;  %v2129_v20 = vadd.f32 %v2128_v11, %v2127_v17  ;;  %v1779_v18 = vadd.f32 %v3819_v29, %v1771_v36  ;;  %v1985_v48 = vmul.f32 %v4011_v1, %v1966_v3  ;;  %v2182_v29 = vpop.permute.xlu1 %2181 }
 0x273   :  { %v1916_v8 = vrot.slane %v4062_v15, 1  ;;  %v2142_v22 = vadd.f32 %v2141_v31, %v2140_v59  ;;  %v1792_v62 = vadd.f32 %v3825_v10, %v1772_v55  ;;  %v1986_v7 = vmul.f32 %v4018_v9, %v1966_v3  ;;  %v2187_v10 = vpop.permute.xlu0 %2186 }
 0x274   :  { %v1929_v37 = vrot.slane %v4065_v5, 1  ;;  %v2130_v38 = vrot.slane %v2129_v20, 2  ;;  %v1780_v19 = vrot.slane %v1779_v18, 4  ;;  %v1994_v50 = vadd.f32 %v1993_v43, %v1985_v48 }
 0x275   :  { %v2199_v26 = vmul.f32 %v4023_v63, %v2177_v61  ;;  %v2143_v52 = vrot.slane %v2142_v22, 2  ;;  %v1793_v28 = vrot.slane %v1792_v62, 4  ;;  %v2007_v27 = vadd.f32 %v2006_v2, %v1986_v7 }
 0x276   :  { %v2200_v33 = vmul.f32 %v4030_v32, %v2177_v61  ;;  %v4076_v14 = vadd.f32 %v2130_v38, %v2129_v20  ;;  %v1781_v1 = vadd.f32 %v1780_v19, %v1779_v18  ;;  %v1987_v39 = vmul.f32 %v4037_v47, %v1971_v56 }
 0x277   :  { %v2209_v60 = vadd.f32 %v2208_v25, %v2199_v26  ;;  %v4079_v40 = vadd.f32 %v2143_v52, %v2142_v22  ;;  %v1794_v9 = vadd.f32 %v1793_v28, %v1792_v62  ;;  %v1988_v58 = vmul.f32 %v4044_v4, %v1971_v56 }
 0x278   :  { %v2222_v3 = vadd.f32 %v2221_v16, %v2200_v33  ;;  %v1782_v63 = vrot.slane %v1781_v1, 2  ;;  %v1995_v42 = vadd.f32 %v1994_v50, %v1987_v39  ;;  %v2201_v17 = vmul.f32 %v2529_v46, %v2182_v29 }
 0x279   :  { %v2202_v43 = vmul.f32 %v2531_v24, %v2182_v29  ;;  %v1795_v35 = vrot.slane %v1794_v9, 2  ;;  %v2008_v32 = vadd.f32 %v2007_v27, %v1988_v58  ;;  %v2203_v23 = vmul.f32 %v2533_v41, %v2187_v10 }
 0x27a   :  { %v2204_v59 = vmul.f32 %v2535_v21, %v2187_v10  ;;  %v1783_v2 = vadd.f32 %v1782_v63, %v1781_v1  ;;  %v1996_v57 = vrot.slane %v1995_v42, 4  ;;  %v2210_v61 = vadd.f32 %v2209_v60, %v2201_v17 }
 0x27b   :  { %v2223_v11 = vadd.f32 %v2222_v3, %v2202_v43  ;;  %v1796_v47 = vadd.f32 %v1795_v35, %v1794_v9  ;;  %v2009_v25 = vrot.slane %v2008_v32, 4  ;;  %v4251_v36 = vrot.slane %v3432_v34, 2 }
 0x27c   :  { %v4252_v4 = vrot.slane %v3435_v49, 2  ;;  %v1784_v46 = vrot.slane %v1783_v2, 1  ;;  %v1997_v24 = vadd.f32 %v1996_v57, %v1995_v42  ;;  %v2211_v16 = vadd.f32 %v2210_v61, %v2203_v23 }
 0x27d   :  { %v384_v31 = vadd.f32 %v4251_v36, %v3432_v34  ;;  %v2224_v55 = vadd.f32 %v2223_v11, %v2204_v59  ;;  %v1797_v41 = vrot.slane %v1796_v47, 1  ;;  %v2010_v21 = vadd.f32 %v2009_v25, %v2008_v32 }
 0x27e   :  { %v397_v56 = vadd.f32 %v4252_v4, %v3435_v49  ;;  %v1785_v48 = vadd.f32 %v1784_v46, %v1783_v2  ;;  %v1998_v22 = vrot.slane %v1997_v24, 2  ;;  %v2212_v62 = vrot.slane %v2211_v16, 4  ;;  %v4258_v4 = vld [vmem:[#allocation14_spill] sm:$0xff] }
 0x27f   :  { %v385_v20 = vrot.slane %v384_v31, 1  ;;  %v2225_v7 = vrot.slane %v2224_v55, 4  ;;  %v1798_v38 = vadd.f32 %v1797_v41, %v1796_v47  ;;  %v2011_v19 = vrot.slane %v2010_v21, 2  ;;  %v4260_v41 = vld [vmem:[#allocation33_spill] sm:$0xff] }
 0x280   :  { %v398_v18 = vrot.slane %v397_v56, 1  ;;  %v1799_v26 = vadd.f32 %v1785_v48, %v3763_v6  ;;  %v1999_v52 = vadd.f32 %v1998_v22, %v1997_v24  ;;  %v2213_v49 = vadd.f32 %v2212_v62, %v2211_v16  ;;  %v4261_v22 = vld [vmem:[#allocation16_spill] sm:$0xff] }
 0x281   :  { %v386_v50 = vadd.f32 %v385_v20, %v384_v31  ;;  %v2226_v28 = vadd.f32 %v2225_v7, %v2224_v55  ;;  %v1800_v27 = vadd.f32 %v1798_v38, %v3768_v0  ;;  %v2012_v33 = vadd.f32 %v2011_v19, %v2010_v21  ;;  %v4257_v31 = vld [vmem:[#allocation28_spill] sm:$0xff]  ;;  %v4259_v55 = vld [vmem:[#allocation15_spill] sm:$0xff] }
 0x282   :  { %v399_v34 = vadd.f32 %v398_v18, %v397_v56  ;;  %v4253_v29 = vrot.slane %v3379_v30, 1  ;;  %v4254_v60 = vrot.slane %v3386_v44, 1  ;;  %v2000_v10 = vrot.slane %v1999_v52, 1 }
 0x283   :  { %v2214_v9 = vrot.slane %v2213_v49, 2  ;;  %v2227_v3 = vrot.slane %v2226_v28, 2  ;;  %v4255_v6 = vrot.slane %v3553_v54, 1  ;;  %v2013_v63 = vrot.slane %v2012_v33, 1 }
 0x284   :  { %v602_v1 = vadd.f32 %v4253_v29, %v3379_v30  ;;  %v615_v39 = vadd.f32 %v4254_v60, %v3386_v44  ;;  %v4256_v0 = vrot.slane %v3562_v12, 1  ;;  %v2001_v35 = vadd.f32 %v2000_v10, %v1999_v52  ;;  %v2544_v10 = vld [vmem:[#allocation2] sm:$0xf] }
 0x285   :  { %v818_v58 = vadd.f32 %v4255_v6, %v3553_v54  ;;  %v2215_v30 = vadd.f32 %v2214_v9, %v2213_v49  ;;  %v2228_v32 = vadd.f32 %v2227_v3, %v2226_v28  ;;  %v1033_v23 = vrot.slane %v3654_v51, 1  ;;  %v2545_v3 = vld [vmem:[#allocation2 + $0x8] sm:$0xf] }
 0x286   :  { %v616_v42 = vadd.f32 %v602_v1, %v386_v50  ;;  %v617_v17 = vadd.f32 %v615_v39, %v399_v34  ;;  %v831_v43 = vadd.f32 %v4256_v0, %v3562_v12  ;;  %v2014_v44 = vadd.f32 %v2013_v63, %v2012_v33  ;;  %v2547_v0 = vld [vmem:[#allocation2 + $0x8] sm:$0xf0] }
 0x287   :  { %v1046_v57 = vrot.slane %v3658_v13, 1  ;;  %v2015_v61 = vadd.f32 %v2001_v35, %v1799_v26  ;;  %v2216_v11 = vrot.slane %v2215_v30, 1  ;;  %v2229_v54 = vrot.slane %v2228_v32, 1 }
 0x288   :  { %v832_v59 = vadd.f32 %v818_v58, %v616_v42  ;;  %v833_v2 = vadd.f32 %v831_v43, %v617_v17  ;;  %v1034_v47 = vadd.f32 %v1033_v23, %v3654_v51  ;;  %v2016_v25 = vadd.f32 %v2014_v44, %v1800_v27  ;;  %v4262_v51 = vld [vmem:[#allocation11_spill] sm:$0xff] }
 0x289   :  { %v1047_v36 = vadd.f32 %v1046_v57, %v3658_v13  ;;  %v1132_v12 = vadd.f32 %v3676_v53, %v3585_v45  ;;  %v1133_v56 = vadd.f32 %v4258_v4, %v4257_v31  ;;  %v2217_v46 = vadd.f32 %v2216_v11, %v2215_v30  ;;  %v2546_v42 = vld [vmem:[#allocation2] sm:$0xf0] }
 0x28a   :  { %v2230_v24 = vadd.f32 %v2229_v54, %v2228_v32  ;;  %v1048_v16 = vadd.f32 %v1034_v47, %v832_v59  ;;  %v1715_v21 = vadd.f32 %v4260_v41, %v4259_v55  ;;  %v1716_v62 = vadd.f32 %v4262_v51, %v4261_v22 }
 0x28b   :  { %v1049_v20 = vadd.f32 %v1047_v36, %v833_v2  ;;  %v1134_v18 = vand.u32 2147483647, %v1132_v12  ;;  %v1135_v48 = vand.u32 2147483647, %v1133_v56  ;;  %v1917_v13 = vadd.f32 %v1916_v8, %v4062_v15 }
 0x28c   :  { %v1930_v45 = vadd.f32 %v1929_v37, %v4065_v5  ;;  %v2132_v53 = vrot.slane %v4076_v14, 1  ;;  %v2145_v7 = vrot.slane %v4079_v40, 1  ;;  %v2231_v50 = vadd.f32 %v2217_v46, %v2015_v61 }
 0x28d   :  { %v1136_v38 = vadd.f32 %v1134_v18, %v1048_v16  ;;  %v1137_v19 = vadd.f32 %v1135_v48, %v1049_v20  ;;  %v2232_v34 = vadd.f32 %v2230_v24, %v2016_v25  ;;  %v1931_v26 = vadd.f32 %v1917_v13, %v1715_v21 }
 0x28e   :  { %v1932_v52 = vadd.f32 %v1930_v45, %v1716_v62  ;;  %v2133_v49 = vadd.f32 %v2132_v53, %v4076_v14  ;;  %v2146_v28 = vadd.f32 %v2145_v7, %v4079_v40  ;;  %v2233_v15 = vand.u32 2147483647, %v2231_v50 }
 0x28f   :  { %2536 = vrcp.f32 %v1136_v38  ;;  %v2234_v8 = vand.u32 2147483647, %v2232_v34 }
 0x290   :  { %2538 = vrcp.f32 %v1137_v19  ;;  %v2147_v27 = vadd.f32 %v2133_v49, %v1931_v26  ;;  %v2148_v5 = vadd.f32 %v2146_v28, %v1932_v52 }
 0x292   :  { %v2235_v37 = vadd.f32 %v2233_v15, %v2147_v27  ;;  %v2236_v33 = vadd.f32 %v2234_v8, %v2148_v5 }
 0x294   :  { %2540 = vrcp.f32 %v2235_v37 }
 0x295   :  { %2542 = vrcp.f32 %v2236_v33 }
 0x299   :  { %v2537_v29 = vpop.eup %2536 }
 0x29a   :  { %v2539_v1 = vpop.eup %2538  ;;  %v1139_v60 = vmul.f32 %v2537_v29, %v1132_v12 }
 0x29b   :  { %v1141_v39 = vmul.f32 %v2539_v1, %v1133_v56 }
 0x29c   :  { %v1142_v9 = vmul.f32 %v2544_v10, %v1139_v60 }
 0x29d   :  { %v1143_v14 = vmul.f32 %v2545_v3, %v1141_v39 }
 0x29e   :  { %v2541_v6 = vpop.eup %2540  ;;  %1144 = vst [vmem:[#allocation7] sm:$0xf] %v1142_v9 }
 0x29f   :  { %v2543_v40 = vpop.eup %2542  ;;  %1145 = vst [vmem:[#allocation7 + $0x8] sm:$0xf] %v1143_v14  ;;  %v2238_v58 = vmul.f32 %v2541_v6, %v2231_v50 }
 0x2a0   :  { %v2240_v63 = vmul.f32 %v2543_v40, %v2232_v34 }
 0x2a1   :  { %v2241_v17 = vmul.f32 %v2546_v42, %v2238_v58 }
 0x2a2   :  { %v2242_v43 = vmul.f32 %v2547_v0, %v2240_v63 }
 0x2a3   :  { %2243 = vst [vmem:[#allocation7] sm:$0xf0] %v2241_v17 }
 0x2a4   :  { %2244 = vst [vmem:[#allocation7 + $0x8] sm:$0xf0] %v2242_v43 }
 0x2a5   :  { %2593 = shalt.err (!%p2590_p3)
}
 0x2a6   :  { %s2594_s10 = scalar_lea.hbm %s4138_s2, 256 }
 0x2a7   :  { %p2595_p4 = scmp.ne.s32.totalorder %s4138_s2, %s2594_s10  ;;  %p2598_p5 = scmp.lt.u32.totalorder %s2594_s10, %s4138_s2 }
 0x2a9   :  { %p2600_p6 = pnand %p2598_p5, %p2595_p4 }
 0x2ab   :  { %2603 = shalt.err (!%p2600_p6)
}
 0x2ac   :  { %2254 = dma.vmem_to_hbm [thread:$0]  %s2252_s6, 256, %s4138_s2, [#allocation4]  }
 0x2ad   :  { %2608 = dma.done.wait [#allocation4], 256  }
 0x2ae   :  { %2609 = vsyncadd [#allocation4], 4294967040 }
 0x2af   :  { %2258 = vsyncpa [#allocation3], 1 }
 0x2b0   :  { %2259 = vsyncpa [#allocation4], 1 }
 0x2b1   :  { %2260 = vsyncpa [#allocation5], 1 }

</bundles_post_ra>
